<compile_context>
chip_gen: v6e
topology: v6e:2x2x1
jax: 0.10.0
libtpu: 0.0.40
codegen_flags: <defaults>
</compile_context>

<pallas_src>
import functools

import jax
import jax.numpy as jnp
from jax.experimental import pallas as pl
from jax.experimental.pallas import tpu as pltpu


def _mha_block_kernel(x_ref, wqkv_ref, bqkv_ref, wo_ref, bo_ref, ln_ref,
                      o_ref, *, n_heads, eps, mxu_dtype):
    x = x_ref[0].astype(jnp.float32)                      # (S, C)
    S, C = x.shape
    d_head = C // n_heads

    # ---- LayerNorm 1 (over channels) ----
    mu = jnp.mean(x, axis=-1, keepdims=True)
    xc = x - mu
    var = jnp.mean(xc * xc, axis=-1, keepdims=True)
    xn = xc * jax.lax.rsqrt(var + eps)
    xn = xn * ln_ref[0:1, :].astype(jnp.float32) + ln_ref[1:2, :].astype(jnp.float32)

    # ---- fused Q/K/V projection: one (S,C) @ (C,3C) MXU op ----
    # (attention scale is already folded into the Q columns host-side)
    qkv = jnp.dot(xn.astype(mxu_dtype), wqkv_ref[...].astype(mxu_dtype),
                  preferred_element_type=jnp.float32)
    qkv = qkv + bqkv_ref[...].astype(jnp.float32)         # (S, 3C)

    def split_heads(t):                                    # (S, C) -> (nh, S, dh)
        return jnp.stack(
            [t[:, h * d_head:(h + 1) * d_head] for h in range(n_heads)], axis=0)

    q_h = split_heads(qkv[:, :C]).astype(mxu_dtype)
    k_h = split_heads(qkv[:, C:2 * C]).astype(mxu_dtype)
    v_h = split_heads(qkv[:, 2 * C:]).astype(mxu_dtype)

    # ---- head-batched scaled-dot-product attention ----
    s = jnp.einsum('hqd,hkd->hqk', q_h, k_h,
                   preferred_element_type=jnp.float32)     # (nh, S, S)
    m = jnp.max(s, axis=-1, keepdims=True)
    p = jnp.exp(s - m)
    p = p / jnp.sum(p, axis=-1, keepdims=True)
    o_h = jnp.einsum('hqk,hkd->hqd', p.astype(mxu_dtype), v_h,
                     preferred_element_type=jnp.float32)   # (nh, S, dh)

    # concat heads in registers (no VMEM scratch / masked partial stores)
    attn = jnp.concatenate([o_h[h] for h in range(n_heads)], axis=-1)  # (S, C)

    # ---- output projection + residual + LayerNorm 2 ----
    out = jnp.dot(attn.astype(mxu_dtype), wo_ref[...].astype(mxu_dtype),
                  preferred_element_type=jnp.float32)
    out = out + bo_ref[...].astype(jnp.float32)
    y = out + x                                            # residual (pre-LN1 tokens)

    mu2 = jnp.mean(y, axis=-1, keepdims=True)
    yc = y - mu2
    var2 = jnp.mean(yc * yc, axis=-1, keepdims=True)
    yn = yc * jax.lax.rsqrt(var2 + eps)
    yn = yn * ln_ref[2:3, :].astype(jnp.float32) + ln_ref[3:4, :].astype(jnp.float32)

    o_ref[0] = yn.astype(o_ref.dtype)


def multihead_attention_block(x, params, *, n_heads, eps=1e-5):
    """x: (B, C, H, W). params: pre-transposed (in_dim x out_dim) weights, (1,C) vectors."""
    B, C, H, W = x.shape
    assert C % n_heads == 0
    S = H * W
    d_head = C // n_heads
    scale = 1.0 / float(d_head) ** 0.5

    # NCHW -> (B, S, C): channel-last token layout (C on lanes, S on sublanes).
    x_seq = jnp.transpose(x, (0, 2, 3, 1)).reshape(B, S, C)

    # Host-side (trace-time) fusion of weights; scale folded into the Q branch.
    wqkv_t = jnp.concatenate(
        [params["wq_t"] * scale, params["wk_t"], params["wv_t"]], axis=1)   # (C, 3C)
    bqkv = jnp.concatenate(
        [params["bq"] * scale, params["bk"], params["bv"]], axis=1)         # (1, 3C)
    ln = jnp.concatenate(
        [params["g1"], params["b1"], params["g2"], params["b2"]], axis=0)   # (4, C)

    # bf16 operands only when the model itself runs bf16; f32 inputs keep f32
    # operands so accuracy matches the HIGHEST-precision reference at 1e-3.
    mxu_dtype = jnp.bfloat16 if x.dtype == jnp.bfloat16 else jnp.float32

    kernel = functools.partial(_mha_block_kernel, n_heads=n_heads, eps=eps,
                               mxu_dtype=mxu_dtype)
    full = lambda b: (0, 0)

    out_seq = pl.pallas_call(
        kernel,
        out_shape=jax.ShapeDtypeStruct((B, S, C), x.dtype),
        grid_spec=pltpu.PrefetchScalarGridSpec(
            num_scalar_prefetch=0,
            grid=(B,),
            in_specs=[
                pl.BlockSpec((1, S, C), lambda b: (b, 0, 0)),   # tokens
                pl.BlockSpec((C, 3 * C), full),                 # fused Wqkv^T
                pl.BlockSpec((1, 3 * C), full),                 # fused bqkv
                pl.BlockSpec((C, C), full),                     # Wo^T
                pl.BlockSpec((1, C), full),                     # bo
                pl.BlockSpec((4, C), full),                     # [g1; b1; g2; b2]
            ],
            out_specs=pl.BlockSpec((1, S, C), lambda b: (b, 0, 0)),
        ),
        compiler_params=pltpu.CompilerParams(
            dimension_semantics=("parallel",),      # megacore-shard the batch grid
        ),
    )(x_seq, wqkv_t, bqkv, params["wo_t"], params["bo"], ln)

    return jnp.transpose(out_seq.reshape(B, H, W, C), (0, 3, 1, 2))


def _reference(x, params, *, n_heads, eps=1e-5):
    """Pure-JAX reference mirroring PyTorch nn.MultiheadAttention + LayerNorms."""
    B, C, H, W = x.shape
    S = H * W
    hp = jax.lax.Precision.HIGHEST
    xs = jnp.transpose(x, (0, 2, 3, 1)).reshape(B, S, C).astype(jnp.float32)
    res = xs
    mu = xs.mean(-1, keepdims=True)
    var = ((xs - mu) ** 2).mean(-1, keepdims=True)
    xn = (xs - mu) / jnp.sqrt(var + eps) * params["g1"] + params["b1"]
    q = jnp.einsum("bsc,cd->bsd", xn, params["wq_t"], precision=hp) + params["bq"]
    k = jnp.einsum("bsc,cd->bsd", xn, params["wk_t"], precision=hp) + params["bk"]
    v = jnp.einsum("bsc,cd->bsd", xn, params["wv_t"], precision=hp) + params["bv"]
    dh = C // n_heads
    q = q.reshape(B, S, n_heads, dh)
    k = k.reshape(B, S, n_heads, dh)
    v = v.reshape(B, S, n_heads, dh)
    s = jnp.einsum("bqhd,bkhd->bhqk", q, k, precision=hp) / jnp.sqrt(float(dh))
    p = jax.nn.softmax(s, axis=-1)
    o = jnp.einsum("bhqk,bkhd->bqhd", p, v, precision=hp).reshape(B, S, C)
    out = jnp.einsum("bsc,cd->bsd", o, params["wo_t"], precision=hp) + params["bo"]
    y = out + res
    mu2 = y.mean(-1, keepdims=True)
    var2 = ((y - mu2) ** 2).mean(-1, keepdims=True)
    yn = (y - mu2) / jnp.sqrt(var2 + eps) * params["g2"] + params["b2"]
    return jnp.transpose(yn.reshape(B, H, W, C), (0, 3, 1, 2)).astype(x.dtype)


if __name__ == "__main__":
    key = jax.random.PRNGKey(0)
    B, C, H, W = 2, 32, 8, 8          # batch=2, channels=32, 8x8 spatial -> seq=64
    n_heads = 4
    keys = jax.random.split(key, 13)

    x = jax.random.normal(keys[0], (B, C, H, W), dtype=jnp.float32)
    wscale = 1.0 / (C ** 0.5)
    params = {
        "wq_t": jax.random.normal(keys[1], (C, C), jnp.float32) * wscale,
        "wk_t": jax.random.normal(keys[2], (C, C), jnp.float32) * wscale,
        "wv_t": jax.random.normal(keys[3], (C, C), jnp.float32) * wscale,
        "wo_t": jax.random.normal(keys[4], (C, C), jnp.float32) * wscale,
        "bq": 0.1 * jax.random.normal(keys[5], (1, C), jnp.float32),
        "bk": 0.1 * jax.random.normal(keys[6], (1, C), jnp.float32),
        "bv": 0.1 * jax.random.normal(keys[7], (1, C), jnp.float32),
        "bo": 0.1 * jax.random.normal(keys[8], (1, C), jnp.float32),
        "g1": 1.0 + 0.1 * jax.random.normal(keys[9], (1, C), jnp.float32),
        "b1": 0.1 * jax.random.normal(keys[10], (1, C), jnp.float32),
        "g2": 1.0 + 0.1 * jax.random.normal(keys[11], (1, C), jnp.float32),
        "b2": 0.1 * jax.random.normal(keys[12], (1, C), jnp.float32),
    }

    y = multihead_attention_block(x, params, n_heads=n_heads)
    y = jax.block_until_ready(y)

    y_ref = jax.block_until_ready(_reference(x, params, n_heads=n_heads))

    assert y.shape == x.shape and y.dtype == x.dtype
    max_err = float(jnp.max(jnp.abs(y - y_ref)))
    assert jnp.allclose(y, y_ref, atol=1e-3, rtol=1e-3), f"max abs err {max_err}"

    print("KERNEL_OK")
</pallas_src>

<mosaic_0001>
module attributes {stable_mosaic.version = 11 : i64} {
  func.func @_mha_block_kernel(%arg0: i32, %arg1: memref<1x64x32xf32, #tpu.memory_space<vmem>>, %arg2: memref<32x96xf32, #tpu.memory_space<vmem>>, %arg3: memref<1x96xf32, #tpu.memory_space<vmem>>, %arg4: memref<32x32xf32, #tpu.memory_space<vmem>>, %arg5: memref<1x32xf32, #tpu.memory_space<vmem>>, %arg6: memref<4x32xf32, #tpu.memory_space<vmem>>, %arg7: memref<1x64x32xf32, #tpu.memory_space<vmem>>) attributes {dimension_semantics = [#tpu.dimension_semantics<parallel>], iteration_bounds = array<i64: 2>, scalar_prefetch = 0 : i64, scratch_operands = 0 : i64, tpu.core_type = #tpu.core_type<tc>, window_params = [{transform_indices = @transform_0, window_bounds = array<i64: 1, 64, 32>}, {pipeline_mode = #tpu.pipeline_mode<synchronous>, transform_indices = @transform_1, window_bounds = array<i64: 32, 96>}, {pipeline_mode = #tpu.pipeline_mode<synchronous>, transform_indices = @transform_2, window_bounds = array<i64: 1, 96>}, {pipeline_mode = #tpu.pipeline_mode<synchronous>, transform_indices = @transform_3, window_bounds = array<i64: 32, 32>}, {pipeline_mode = #tpu.pipeline_mode<synchronous>, transform_indices = @transform_4, window_bounds = array<i64: 1, 32>}, {pipeline_mode = #tpu.pipeline_mode<synchronous>, transform_indices = @transform_5, window_bounds = array<i64: 4, 32>}, {transform_indices = @transform_6, window_bounds = array<i64: 1, 64, 32>}]} {
    %c0 = arith.constant 0 : index
    %c0_0 = arith.constant 0 : index
    %c0_1 = arith.constant 0 : index
    %0 = vector.load %arg1[%c0, %c0_0, %c0_1] : memref<1x64x32xf32, #tpu.memory_space<vmem>>, vector<1x64x32xf32>
    %1 = vector.shape_cast %0 : vector<1x64x32xf32> to vector<64x32xf32>
    %cst = arith.constant dense<0.000000e+00> : vector<64xf32>
    %2 = vector.multi_reduction <add>, %1, %cst [1] : vector<64x32xf32> to vector<64xf32>
    %3 = vector.shape_cast %2 : vector<64xf32> to vector<64x1xf32>
    %cst_2 = arith.constant 3.200000e+01 : f32
    %4 = vector.broadcast %cst_2 : f32 to vector<64x1xf32>
    %5 = arith.divf %3, %4 : vector<64x1xf32>
    %6 = vector.broadcast %5 : vector<64x1xf32> to vector<64x32xf32>
    %7 = arith.subf %1, %6 : vector<64x32xf32>
    %8 = arith.mulf %7, %7 : vector<64x32xf32>
    %cst_3 = arith.constant dense<0.000000e+00> : vector<64xf32>
    %9 = vector.multi_reduction <add>, %8, %cst_3 [1] : vector<64x32xf32> to vector<64xf32>
    %10 = vector.shape_cast %9 : vector<64xf32> to vector<64x1xf32>
    %cst_4 = arith.constant 3.200000e+01 : f32
    %11 = vector.broadcast %cst_4 : f32 to vector<64x1xf32>
    %12 = arith.divf %10, %11 : vector<64x1xf32>
    %cst_5 = arith.constant 9.99999974E-6 : f32
    %13 = vector.broadcast %cst_5 : f32 to vector<64x1xf32>
    %14 = arith.addf %12, %13 : vector<64x1xf32>
    %15 = math.rsqrt %14 : vector<64x1xf32>
    %16 = vector.broadcast %15 : vector<64x1xf32> to vector<64x32xf32>
    %17 = arith.mulf %7, %16 : vector<64x32xf32>
    %c0_6 = arith.constant 0 : index
    %c0_7 = arith.constant 0 : index
    %18 = vector.load %arg6[%c0_6, %c0_7] : memref<4x32xf32, #tpu.memory_space<vmem>>, vector<1x32xf32>
    %19 = vector.broadcast %18 : vector<1x32xf32> to vector<64x32xf32>
    %20 = arith.mulf %17, %19 : vector<64x32xf32>
    %c1 = arith.constant 1 : index
    %c0_8 = arith.constant 0 : index
    %21 = vector.load %arg6[%c1, %c0_8] : memref<4x32xf32, #tpu.memory_space<vmem>>, vector<1x32xf32>
    %22 = vector.broadcast %21 : vector<1x32xf32> to vector<64x32xf32>
    %23 = arith.addf %20, %22 : vector<64x32xf32>
    %c0_9 = arith.constant 0 : index
    %c0_10 = arith.constant 0 : index
    %24 = vector.load %arg2[%c0_9, %c0_10] : memref<32x96xf32, #tpu.memory_space<vmem>>, vector<32x96xf32>
    %cst_11 = arith.constant dense<0.000000e+00> : vector<64x96xf32>
    %25 = tpu.matmul %23, %24, %cst_11 {dimension_numbers = #tpu.dot_dimension_numbers<[1], [0], [0], [1], [0, 0, 1, 1], [], []>} : vector<64x32xf32>, vector<32x96xf32>, vector<64x96xf32> -> vector<64x96xf32>
    %c0_12 = arith.constant 0 : index
    %c0_13 = arith.constant 0 : index
    %26 = vector.load %arg3[%c0_12, %c0_13] : memref<1x96xf32, #tpu.memory_space<vmem>>, vector<1x96xf32>
    %27 = vector.broadcast %26 : vector<1x96xf32> to vector<64x96xf32>
    %28 = arith.addf %25, %27 : vector<64x96xf32>
    %29 = vector.extract_strided_slice %28 {offsets = [0, 0], sizes = [64, 32], strides = [1, 1]} : vector<64x96xf32> to vector<64x32xf32>
    %30 = vector.extract_strided_slice %29 {offsets = [0, 0], sizes = [64, 8], strides = [1, 1]} : vector<64x32xf32> to vector<64x8xf32>
    %31 = vector.extract_strided_slice %29 {offsets = [0, 8], sizes = [64, 8], strides = [1, 1]} : vector<64x32xf32> to vector<64x8xf32>
    %32 = vector.extract_strided_slice %29 {offsets = [0, 16], sizes = [64, 8], strides = [1, 1]} : vector<64x32xf32> to vector<64x8xf32>
    %33 = vector.extract_strided_slice %29 {offsets = [0, 24], sizes = [64, 8], strides = [1, 1]} : vector<64x32xf32> to vector<64x8xf32>
    %34 = vector.shape_cast %30 : vector<64x8xf32> to vector<1x64x8xf32>
    %35 = vector.shape_cast %31 : vector<64x8xf32> to vector<1x64x8xf32>
    %36 = vector.shape_cast %32 : vector<64x8xf32> to vector<1x64x8xf32>
    %37 = vector.shape_cast %33 : vector<64x8xf32> to vector<1x64x8xf32>
    %38 = tpu.concatenate %34, %35, %36, %37 in 0 : vector<1x64x8xf32>, vector<1x64x8xf32>, vector<1x64x8xf32>, vector<1x64x8xf32> -> vector<4x64x8xf32>
    %39 = vector.extract_strided_slice %28 {offsets = [0, 32], sizes = [64, 32], strides = [1, 1]} : vector<64x96xf32> to vector<64x32xf32>
    %40 = vector.extract_strided_slice %39 {offsets = [0, 0], sizes = [64, 8], strides = [1, 1]} : vector<64x32xf32> to vector<64x8xf32>
    %41 = vector.extract_strided_slice %39 {offsets = [0, 8], sizes = [64, 8], strides = [1, 1]} : vector<64x32xf32> to vector<64x8xf32>
    %42 = vector.extract_strided_slice %39 {offsets = [0, 16], sizes = [64, 8], strides = [1, 1]} : vector<64x32xf32> to vector<64x8xf32>
    %43 = vector.extract_strided_slice %39 {offsets = [0, 24], sizes = [64, 8], strides = [1, 1]} : vector<64x32xf32> to vector<64x8xf32>
    %44 = vector.shape_cast %40 : vector<64x8xf32> to vector<1x64x8xf32>
    %45 = vector.shape_cast %41 : vector<64x8xf32> to vector<1x64x8xf32>
    %46 = vector.shape_cast %42 : vector<64x8xf32> to vector<1x64x8xf32>
    %47 = vector.shape_cast %43 : vector<64x8xf32> to vector<1x64x8xf32>
    %48 = tpu.concatenate %44, %45, %46, %47 in 0 : vector<1x64x8xf32>, vector<1x64x8xf32>, vector<1x64x8xf32>, vector<1x64x8xf32> -> vector<4x64x8xf32>
    %49 = vector.extract_strided_slice %28 {offsets = [0, 64], sizes = [64, 32], strides = [1, 1]} : vector<64x96xf32> to vector<64x32xf32>
    %50 = vector.extract_strided_slice %49 {offsets = [0, 0], sizes = [64, 8], strides = [1, 1]} : vector<64x32xf32> to vector<64x8xf32>
    %51 = vector.extract_strided_slice %49 {offsets = [0, 8], sizes = [64, 8], strides = [1, 1]} : vector<64x32xf32> to vector<64x8xf32>
    %52 = vector.extract_strided_slice %49 {offsets = [0, 16], sizes = [64, 8], strides = [1, 1]} : vector<64x32xf32> to vector<64x8xf32>
    %53 = vector.extract_strided_slice %49 {offsets = [0, 24], sizes = [64, 8], strides = [1, 1]} : vector<64x32xf32> to vector<64x8xf32>
    %54 = vector.shape_cast %50 : vector<64x8xf32> to vector<1x64x8xf32>
    %55 = vector.shape_cast %51 : vector<64x8xf32> to vector<1x64x8xf32>
    %56 = vector.shape_cast %52 : vector<64x8xf32> to vector<1x64x8xf32>
    %57 = vector.shape_cast %53 : vector<64x8xf32> to vector<1x64x8xf32>
    %58 = tpu.concatenate %54, %55, %56, %57 in 0 : vector<1x64x8xf32>, vector<1x64x8xf32>, vector<1x64x8xf32>, vector<1x64x8xf32> -> vector<4x64x8xf32>
    "tpu.trace_start"() <{level = 10 : i32, message = "hqd,hkd->hqk"}> : () -> ()
    %cst_14 = arith.constant dense<0.000000e+00> : vector<4x64x64xf32>
    %59 = tpu.matmul %38, %48, %cst_14 {dimension_numbers = #tpu.dot_dimension_numbers<[2], [2], [1], [1], [0, 0, 0, 1, 1, 1], [0], [0]>} : vector<4x64x8xf32>, vector<4x64x8xf32>, vector<4x64x64xf32> -> vector<4x64x64xf32>
    "tpu.trace_stop"() : () -> ()
    %cst_15 = arith.constant dense<0xFF800000> : vector<4x64xf32>
    %60 = vector.multi_reduction <maximumf>, %59, %cst_15 [2] : vector<4x64x64xf32> to vector<4x64xf32>
    %61 = vector.shape_cast %60 : vector<4x64xf32> to vector<4x64x1xf32>
    %62 = vector.broadcast %61 : vector<4x64x1xf32> to vector<4x64x64xf32>
    %63 = arith.subf %59, %62 : vector<4x64x64xf32>
    %64 = math.exp %63 : vector<4x64x64xf32>
    %cst_16 = arith.constant dense<0.000000e+00> : vector<4x64xf32>
    %65 = vector.multi_reduction <add>, %64, %cst_16 [2] : vector<4x64x64xf32> to vector<4x64xf32>
    %66 = vector.shape_cast %65 : vector<4x64xf32> to vector<4x64x1xf32>
    %67 = vector.broadcast %66 : vector<4x64x1xf32> to vector<4x64x64xf32>
    %68 = arith.divf %64, %67 : vector<4x64x64xf32>
    "tpu.trace_start"() <{level = 10 : i32, message = "hqk,hkd->hqd"}> : () -> ()
    %cst_17 = arith.constant dense<0.000000e+00> : vector<4x64x8xf32>
    %69 = tpu.matmul %68, %58, %cst_17 {dimension_numbers = #tpu.dot_dimension_numbers<[2], [1], [1], [2], [0, 0, 0, 1, 1, 2], [0], [0]>} : vector<4x64x64xf32>, vector<4x64x8xf32>, vector<4x64x8xf32> -> vector<4x64x8xf32>
    "tpu.trace_stop"() : () -> ()
    %70 = vector.extract_strided_slice %69 {offsets = [0, 0, 0], sizes = [1, 64, 8], strides = [1, 1, 1]} : vector<4x64x8xf32> to vector<1x64x8xf32>
    %71 = vector.shape_cast %70 : vector<1x64x8xf32> to vector<64x8xf32>
    %72 = vector.extract_strided_slice %69 {offsets = [1, 0, 0], sizes = [1, 64, 8], strides = [1, 1, 1]} : vector<4x64x8xf32> to vector<1x64x8xf32>
    %73 = vector.shape_cast %72 : vector<1x64x8xf32> to vector<64x8xf32>
    %74 = vector.extract_strided_slice %69 {offsets = [2, 0, 0], sizes = [1, 64, 8], strides = [1, 1, 1]} : vector<4x64x8xf32> to vector<1x64x8xf32>
    %75 = vector.shape_cast %74 : vector<1x64x8xf32> to vector<64x8xf32>
    %76 = vector.extract_strided_slice %69 {offsets = [3, 0, 0], sizes = [1, 64, 8], strides = [1, 1, 1]} : vector<4x64x8xf32> to vector<1x64x8xf32>
    %77 = vector.shape_cast %76 : vector<1x64x8xf32> to vector<64x8xf32>
    %78 = tpu.concatenate %71, %73, %75, %77 in 1 : vector<64x8xf32>, vector<64x8xf32>, vector<64x8xf32>, vector<64x8xf32> -> vector<64x32xf32>
    %c0_18 = arith.constant 0 : index
    %c0_19 = arith.constant 0 : index
    %79 = vector.load %arg4[%c0_18, %c0_19] : memref<32x32xf32, #tpu.memory_space<vmem>>, vector<32x32xf32>
    %cst_20 = arith.constant dense<0.000000e+00> : vector<64x32xf32>
    %80 = tpu.matmul %78, %79, %cst_20 {dimension_numbers = #tpu.dot_dimension_numbers<[1], [0], [0], [1], [0, 0, 1, 1], [], []>} : vector<64x32xf32>, vector<32x32xf32>, vector<64x32xf32> -> vector<64x32xf32>
    %c0_21 = arith.constant 0 : index
    %c0_22 = arith.constant 0 : index
    %81 = vector.load %arg5[%c0_21, %c0_22] : memref<1x32xf32, #tpu.memory_space<vmem>>, vector<1x32xf32>
    %82 = vector.broadcast %81 : vector<1x32xf32> to vector<64x32xf32>
    %83 = arith.addf %80, %82 : vector<64x32xf32>
    %84 = arith.addf %83, %1 : vector<64x32xf32>
    %cst_23 = arith.constant dense<0.000000e+00> : vector<64xf32>
    %85 = vector.multi_reduction <add>, %84, %cst_23 [1] : vector<64x32xf32> to vector<64xf32>
    %86 = vector.shape_cast %85 : vector<64xf32> to vector<64x1xf32>
    %cst_24 = arith.constant 3.200000e+01 : f32
    %87 = vector.broadcast %cst_24 : f32 to vector<64x1xf32>
    %88 = arith.divf %86, %87 : vector<64x1xf32>
    %89 = vector.broadcast %88 : vector<64x1xf32> to vector<64x32xf32>
    %90 = arith.subf %84, %89 : vector<64x32xf32>
    %91 = arith.mulf %90, %90 : vector<64x32xf32>
    %cst_25 = arith.constant dense<0.000000e+00> : vector<64xf32>
    %92 = vector.multi_reduction <add>, %91, %cst_25 [1] : vector<64x32xf32> to vector<64xf32>
    %93 = vector.shape_cast %92 : vector<64xf32> to vector<64x1xf32>
    %cst_26 = arith.constant 3.200000e+01 : f32
    %94 = vector.broadcast %cst_26 : f32 to vector<64x1xf32>
    %95 = arith.divf %93, %94 : vector<64x1xf32>
    %cst_27 = arith.constant 9.99999974E-6 : f32
    %96 = vector.broadcast %cst_27 : f32 to vector<64x1xf32>
    %97 = arith.addf %95, %96 : vector<64x1xf32>
    %98 = math.rsqrt %97 : vector<64x1xf32>
    %99 = vector.broadcast %98 : vector<64x1xf32> to vector<64x32xf32>
    %100 = arith.mulf %90, %99 : vector<64x32xf32>
    %c2 = arith.constant 2 : index
    %c0_28 = arith.constant 0 : index
    %101 = vector.load %arg6[%c2, %c0_28] : memref<4x32xf32, #tpu.memory_space<vmem>>, vector<1x32xf32>
    %102 = vector.broadcast %101 : vector<1x32xf32> to vector<64x32xf32>
    %103 = arith.mulf %100, %102 : vector<64x32xf32>
    %c3 = arith.constant 3 : index
    %c0_29 = arith.constant 0 : index
    %104 = vector.load %arg6[%c3, %c0_29] : memref<4x32xf32, #tpu.memory_space<vmem>>, vector<1x32xf32>
    %105 = vector.broadcast %104 : vector<1x32xf32> to vector<64x32xf32>
    %106 = arith.addf %103, %105 : vector<64x32xf32>
    %c0_30 = arith.constant 0 : index
    %c0_31 = arith.constant 0 : index
    %c0_32 = arith.constant 0 : index
    %107 = vector.load %arg7[%c0_30, %c0_31, %c0_32] : memref<1x64x32xf32, #tpu.memory_space<vmem>>, vector<1x64x32xf32>
    %108 = vector.shape_cast %107 : vector<1x64x32xf32> to vector<64x32xf32>
    %109 = vector.shape_cast %106 : vector<64x32xf32> to vector<1x64x32xf32>
    tpu.vector_store %arg7[%c0_30, %c0_31, %c0_32], %109 {strides = array<i32>} : memref<1x64x32xf32, #tpu.memory_space<vmem>>, vector<1x64x32xf32>,
    return
  }
  func.func @transform_0(%arg0: i32) -> (i32, i32, i32) {
    %c0_i32 = arith.constant 0 : i32
    %c0_i32_0 = arith.constant 0 : i32
    %c0_i32_1 = arith.constant 0 : i32
    return %arg0, %c0_i32, %c0_i32_0 : i32, i32, i32
  }
  func.func @transform_1(%arg0: i32) -> (i32, i32) {
    %c0_i32 = arith.constant 0 : i32
    %c0_i32_0 = arith.constant 0 : i32
    %c0_i32_1 = arith.constant 0 : i32
    return %c0_i32, %c0_i32_0 : i32, i32
  }
  func.func @transform_2(%arg0: i32) -> (i32, i32) {
    %c0_i32 = arith.constant 0 : i32
    %c0_i32_0 = arith.constant 0 : i32
    %c0_i32_1 = arith.constant 0 : i32
    return %c0_i32, %c0_i32_0 : i32, i32
  }
  func.func @transform_3(%arg0: i32) -> (i32, i32) {
    %c0_i32 = arith.constant 0 : i32
    %c0_i32_0 = arith.constant 0 : i32
    %c0_i32_1 = arith.constant 0 : i32
    return %c0_i32, %c0_i32_0 : i32, i32
  }
  func.func @transform_4(%arg0: i32) -> (i32, i32) {
    %c0_i32 = arith.constant 0 : i32
    %c0_i32_0 = arith.constant 0 : i32
    %c0_i32_1 = arith.constant 0 : i32
    return %c0_i32, %c0_i32_0 : i32, i32
  }
  func.func @transform_5(%arg0: i32) -> (i32, i32) {
    %c0_i32 = arith.constant 0 : i32
    %c0_i32_0 = arith.constant 0 : i32
    %c0_i32_1 = arith.constant 0 : i32
    return %c0_i32, %c0_i32_0 : i32, i32
  }
  func.func @transform_6(%arg0: i32) -> (i32, i32, i32) {
    %c0_i32 = arith.constant 0 : i32
    %c0_i32_0 = arith.constant 0 : i32
    %c0_i32_1 = arith.constant 0 : i32
    return %arg0, %c0_i32, %c0_i32_0 : i32, i32, i32
  }
}

</mosaic_0001>

<bundles_post_ra>
// kernel: tpu_custom_call.1
= control target key start
LH: loop header
LB: loop body
LE: loop exit
PB: predicated region body
PF: predicated region fallthrough
CT: control target
= control target key end

     0   :  { %s3419_s21 = smov 0   ;;  %s4473_s0 = inlined_call_operand.vmem [shape: f32[2,64,32], index: 0, kind: input, shape index: {}]   ;;  %s4474_s1 = inlined_call_operand.vmem [shape: f32[32,96], index: 1, kind: input, shape index: {}]   ;;  %s4475_s2 = inlined_call_operand.vmem [shape: f32[1,96], index: 2, kind: input, shape index: {}]   ;;  %s4476_s3 = inlined_call_operand.vmem [shape: f32[32,32], index: 3, kind: input, shape index: {}]   ;;  %s4477_s4 = inlined_call_operand.vmem [shape: f32[1,32], index: 4, kind: input, shape index: {}]   ;;  %s4478_s5 = inlined_call_operand.vmem [shape: f32[4,32], index: 5, kind: input, shape index: {}]   ;;  %s4479_s6 = inlined_call_operand.vmem [shape: f32[2,64,32], index: 6, kind: output, shape index: {}]  }
   0x1 LB: > { %s2629_s22 = sadd.s32 4294967295, %s3374_s21   ;;  %p2633_p0 = scmp.ge.s32.totalorder %s3374_s21, 1  ;;  %s3374_s21 = sphi %s3419_s21, %s16_s21  }
   0x2   : > { %p212_p1 = scmp.lt.s32.totalorder %s3374_s21, 3 }
   0x4   : > { %p213_p2 = pnand %p2633_p0, %p212_p1 }
   0x5   : > { %p242_p3 = scmp.lt.s32.totalorder (!%p213_p2), %s2629_s22, 1  ;;  %s3376_s17 = smov (!%p213_p2), 120  }
   0x6   : > { %216 = sbr.rel (%p213_p2) target bundleno = 2254 (0x8ce), region = 44  ;;  %s3377_s18 = smov (!%p213_p2), 112  }
   0x7   : > { %s3378_s19 = smov (!%p213_p2), 104   ;;  %s3379_s20 = smov (!%p213_p2), 96  }
   0x8   : > { %s3380_s24 = smov (!%p213_p2), 64   ;;  %s3381_s25 = smov (!%p213_p2), 8  }
   0x9   : > { %s3382_s27 = smov (!%p213_p2), 16   ;;  %s3383_s12 = smov (!%p213_p2), 24  }
   0xb   : > { %s4481_s22 = smov (!%p242_p3, %s2629_s22), 1  ;;  %vm260_vm0 = vcmask 261120   ;;  %v395_v56 = vld [vmem:[%s4474_s1 + $0x18] sm:$0xff]  ;;  %v394_v57 = vld [vmem:[%s4474_s1 + $0x10] sm:$0xff]  ;;  %v393_v58 = vld [vmem:[%s4474_s1 + $0x8] sm:$0xff]  ;;  %vm604_vm1 = vcmask 64512  }
   0xc   : > { %s2758_s23 = sshll.u32 %s4481_s22, 6  ;;  %2912 = vmatprep.subr.mxu0 %v395_v56  ;;  %v392_v59 = vld [vmem:[%s4474_s1] sm:$0xff]  ;;  %vm1201_vm2 = vcmask 523264   ;;  %vm2279_vm3 = vcmask 195584   ;;  %vm2270_vm4 = vcmask 130048  }
   0xd   : > { %s3435_s26 = scalar_lea.vmem %s4473_s0, %s2758_s23  ;;  %2913 = vmatpush3.msra.mxu0 %v395_v56  ;;  %v2640_v56 = vld [vmem:[%s4475_s2] ss:$0 sm:$0xff] }
   0xe   : > { %v252_v0 = vld [vmem:[%s3435_s26] sm:$0xff]  ;;  %v254_v1 = vld [vmem:[%s3435_s26 + $0x10] sm:$0xff]  ;;  %v253_v2 = vld [vmem:[%s3435_s26 + $0x8] sm:$0xff]  ;;  %2914 = vmatprep.subr.mxu0 %v394_v57 }
   0xf   : > { %v261_v3 = vsel %vm260_vm0, %v252_v0, 0.0  ;;  %v267_v4 = vsel %vm260_vm0, %v254_v1, 0.0  ;;  %v255_v5 = vld [vmem:[%s3435_s26 + $0x18] sm:$0xff]  ;;  %v264_v6 = vsel %vm260_vm0, %v253_v2, 0.0  ;;  %v256_v8 = vld [vmem:[%s3435_s26 + $0x20] sm:$0xff]  ;;  %v257_v9 = vld [vmem:[%s3435_s26 + $0x28] sm:$0xff]  ;;  %2915 = vmatpush3.msra.mxu0 %v394_v57 }
  0x10   : > { %262 = vadd.xlane.f32.xlu0 %v261_v3  ;;  %268 = vadd.xlane.f32.xlu1 %v267_v4  ;;  %v270_v7 = vsel %vm260_vm0, %v255_v5, 0.0  ;;  %v273_v10 = vsel %vm260_vm0, %v256_v8, 0.0  ;;  %v276_v11 = vsel %vm260_vm0, %v257_v9, 0.0  ;;  %v258_v12 = vld [vmem:[%s3435_s26 + $0x30] sm:$0xff]  ;;  %v259_v13 = vld [vmem:[%s3435_s26 + $0x38] sm:$0xff] }
  0x11   : > { %v279_v14 = vsel %vm260_vm0, %v258_v12, 0.0  ;;  %v282_v15 = vsel %vm260_vm0, %v259_v13, 0.0  ;;  %2916 = vmatprep.subr.mxu0 %v393_v58 }
  0x12   : > { %2917 = vmatpush3.msra.mxu0 %v393_v58 }
  0x13   : > { %2918 = vmatprep.subr.mxu0 %v392_v59 }
  0x14   : > { %265 = vadd.xlane.f32.xlu0 %v264_v6  ;;  %271 = vadd.xlane.f32.xlu1 %v270_v7 }
  0x15   : > { %2919 = vmatpush3.msra.mxu0 %v392_v59 }
  0x18   : > { %274 = vadd.xlane.f32.xlu0 %v273_v10  ;;  %277 = vadd.xlane.f32.xlu1 %v276_v11 }
  0x1c   : > { %280 = vadd.xlane.f32.xlu0 %v279_v14  ;;  %283 = vadd.xlane.f32.xlu1 %v282_v15 }
  0x99   : > { %v263_v16 = vpop.xlane.xlu0 %262  ;;  %v269_v17 = vpop.xlane.xlu1 %268 }
  0x9a   : > { %v286_v18 = vmul.f32 0.03125, %v263_v16  ;;  %v288_v19 = vmul.f32 0.03125, %v269_v17 }
  0x9c   : > { %v3453_v20 = vsub.f32 %v252_v0, %v286_v18  ;;  %v3455_v21 = vsub.f32 %v254_v1, %v288_v19 }
  0x9d   : > { %v266_v22 = vpop.xlane.xlu0 %265  ;;  %v272_v23 = vpop.xlane.xlu1 %271 }
  0x9e   : > { %v287_v24 = vmul.f32 0.03125, %v266_v22  ;;  %v289_v25 = vmul.f32 0.03125, %v272_v23  ;;  %v302_v26 = vmul.f32 %v3453_v20, %v3453_v20  ;;  %v304_v27 = vmul.f32 %v3455_v21, %v3455_v21  ;;  %v2638_v22 = vld [vmem:[%s4478_s5] ss:$0 sm:$0xff] }
  0xa0   : > { %v3461_v28 = vsub.f32 %v253_v2, %v287_v24  ;;  %v3463_v29 = vsub.f32 %v255_v5, %v289_v25  ;;  %v310_v30 = vsel %vm260_vm0, %v302_v26, 0.0  ;;  %v316_v33 = vsel %vm260_vm0, %v304_v27, 0.0  ;;  %v2639_v25 = vld [vmem:[%s4478_s5 + $0x1] ss:$0 sm:$0xff] }
  0xa1   : > { %311 = vadd.xlane.f32.xlu0 %v310_v30  ;;  %v275_v31 = vpop.xlane.xlu0 %274  ;;  %v278_v32 = vpop.xlane.xlu1 %277 }
  0xa2   : > { %v290_v34 = vmul.f32 0.03125, %v275_v31  ;;  %v291_v35 = vmul.f32 0.03125, %v278_v32  ;;  %v303_v36 = vmul.f32 %v3461_v28, %v3461_v28  ;;  %v305_v37 = vmul.f32 %v3463_v29, %v3463_v29 }
  0xa4   : > { %v3471_v38 = vsub.f32 %v256_v8, %v290_v34  ;;  %v3473_v39 = vsub.f32 %v257_v9, %v291_v35  ;;  %v313_v40 = vsel %vm260_vm0, %v303_v36, 0.0  ;;  %v319_v43 = vsel %vm260_vm0, %v305_v37, 0.0 }
  0xa5   : > { %317 = vadd.xlane.f32.xlu0 %v316_v33  ;;  %314 = vadd.xlane.f32.xlu1 %v313_v40  ;;  %v281_v41 = vpop.xlane.xlu0 %280  ;;  %v284_v42 = vpop.xlane.xlu1 %283 }
  0xa6   : > { %v292_v44 = vmul.f32 0.03125, %v281_v41  ;;  %v293_v45 = vmul.f32 0.03125, %v284_v42  ;;  %v306_v46 = vmul.f32 %v3471_v38, %v3471_v38  ;;  %v307_v47 = vmul.f32 %v3473_v39, %v3473_v39 }
  0xa8   : > { %v3481_v48 = vsub.f32 %v258_v12, %v292_v44  ;;  %v3483_v49 = vsub.f32 %v259_v13, %v293_v45  ;;  %v322_v50 = vsel %vm260_vm0, %v306_v46, 0.0  ;;  %v325_v51 = vsel %vm260_vm0, %v307_v47, 0.0 }
  0xa9   : > { %320 = vadd.xlane.f32.xlu1 %v319_v43  ;;  %323 = vadd.xlane.f32.xlu0 %v322_v50 }
  0xaa   : > { %v308_v52 = vmul.f32 %v3481_v48, %v3481_v48  ;;  %v309_v53 = vmul.f32 %v3483_v49, %v3483_v49 }
  0xac   : > { %v328_v54 = vsel %vm260_vm0, %v308_v52, 0.0  ;;  %v331_v55 = vsel %vm260_vm0, %v309_v53, 0.0 }
  0xad   : > { %326 = vadd.xlane.f32.xlu1 %v325_v51  ;;  %329 = vadd.xlane.f32.xlu0 %v328_v54 }
  0xb1   : > { %332 = vadd.xlane.f32.xlu1 %v331_v55 }
 0x12a   : > { %v312_v60 = vpop.xlane.xlu0 %311 }
 0x12b   : > { %v334_v61 = vmul.f32 0.03125, %v312_v60 }
 0x12d   : > { %v342_v62 = vadd.f32 1e-05, %v334_v61 }
 0x12e   : > { %v315_v63 = vpop.xlane.xlu1 %314  ;;  %v318_v0 = vpop.xlane.xlu0 %317 }
 0x12f   : > { %3200 = vrsqrt.f32 %v342_v62  ;;  %v335_v1 = vmul.f32 0.03125, %v315_v63  ;;  %v336_v2 = vmul.f32 0.03125, %v318_v0 }
 0x131   : > { %v343_v3 = vadd.f32 1e-05, %v335_v1  ;;  %v344_v4 = vadd.f32 1e-05, %v336_v2 }
 0x132   : > { %v321_v5 = vpop.xlane.xlu1 %320  ;;  %v324_v6 = vpop.xlane.xlu0 %323 }
 0x133   : > { %3202 = vrsqrt.f32 %v343_v3  ;;  %v337_v7 = vmul.f32 0.03125, %v321_v5  ;;  %v338_v8 = vmul.f32 0.03125, %v324_v6 }
 0x134   : > { %3204 = vrsqrt.f32 %v344_v4 }
 0x135   : > { %v345_v9 = vadd.f32 1e-05, %v337_v7  ;;  %v346_v10 = vadd.f32 1e-05, %v338_v8 }
 0x136   : > { %v327_v11 = vpop.xlane.xlu1 %326  ;;  %v330_v12 = vpop.xlane.xlu0 %329 }
 0x137   : > { %3206 = vrsqrt.f32 %v345_v9  ;;  %v339_v13 = vmul.f32 0.03125, %v327_v11  ;;  %v340_v14 = vmul.f32 0.03125, %v330_v12 }
 0x138   : > { %3208 = vrsqrt.f32 %v346_v10 }
 0x139   : > { %v347_v15 = vadd.f32 1e-05, %v339_v13  ;;  %v348_v16 = vadd.f32 1e-05, %v340_v14 }
 0x13a   : > { %v333_v17 = vpop.xlane.xlu1 %332 }
 0x13b   : > { %3210 = vrsqrt.f32 %v347_v15  ;;  %v341_v18 = vmul.f32 0.03125, %v333_v17 }
 0x13c   : > { %v3201_v19 = vpop.eup %3200  ;;  %3212 = vrsqrt.f32 %v348_v16 }
 0x13d   : > { %v349_v23 = vadd.f32 1e-05, %v341_v18  ;;  %v358_v24 = vmul.f32 %v3201_v19, %v3453_v20 }
 0x13f   : > { %3214 = vrsqrt.f32 %v349_v23  ;;  %v371_v26 = vmul.f32 %v2638_v22, %v358_v24 }
 0x140   : > { %v3203_v27 = vpop.eup %3202 }
 0x141   : > { %v3205_v30 = vpop.eup %3204  ;;  %v384_v31 = vadd.f32 %v2639_v25, %v371_v26  ;;  %v359_v32 = vmul.f32 %v3203_v27, %v3461_v28 }
 0x142   : > { %v360_v33 = vmul.f32 %v3205_v30, %v3455_v21 }
 0x143   : > { %2920 = vmatprep.mubr.msk.f32.mxu0 %vm260_vm0, %v384_v31  ;;  %v372_v34 = vmul.f32 %v2638_v22, %v359_v32 }
 0x144   : > { %v3207_v35 = vpop.eup %3206  ;;  %v373_v36 = vmul.f32 %v2638_v22, %v360_v33 }
 0x145   : > { %v3209_v37 = vpop.eup %3208  ;;  %v385_v20 = vadd.f32 %v2639_v25, %v372_v34  ;;  %v361_v40 = vmul.f32 %v3207_v35, %v3463_v29 }
 0x146   : > { %v386_v41 = vadd.f32 %v2639_v25, %v373_v36  ;;  %v362_v42 = vmul.f32 %v3209_v37, %v3471_v38 }
 0x147   : > { %2921 = vmatmul.mubr.msk.f32.vlgmr.msra.gmra.mxu0 %vm260_vm0, %v385_v20  ;;  %v374_v43 = vmul.f32 %v2638_v22, %v361_v40 }
 0x148   : > { %v3211_v44 = vpop.eup %3210  ;;  %2923 = vmatprep.mubr.msk.f32.mxu0 %vm260_vm0, %v386_v41  ;;  %v375_v28 = vmul.f32 %v2638_v22, %v362_v42 }
 0x149   : > { %v3213_v21 = vpop.eup %3212  ;;  %v387_v45 = vadd.f32 %v2639_v25, %v374_v43  ;;  %v363_v46 = vmul.f32 %v3211_v44, %v3473_v39 }
 0x14a   : > { %v388_v47 = vadd.f32 %v2639_v25, %v375_v28  ;;  %v364_v50 = vmul.f32 %v3213_v21, %v3481_v48 }
 0x14b   : > { %2924 = vmatmul.mubr.msk.f32.gmra.mxu0 %vm260_vm0, %v387_v45  ;;  %v376_v29 = vmul.f32 %v2638_v22, %v363_v46 }
 0x14c   : > { %v3215_v51 = vpop.eup %3214  ;;  %2926 = vmatprep.mubr.msk.f32.mxu0 %vm260_vm0, %v388_v47  ;;  %v377_v38 = vmul.f32 %v2638_v22, %v364_v50 }
 0x14d   : > { %v389_v52 = vadd.f32 %v2639_v25, %v376_v29  ;;  %v365_v53 = vmul.f32 %v3215_v51, %v3483_v49 }
 0x14e   : > { %v390_v54 = vadd.f32 %v2639_v25, %v377_v38 }
 0x14f   : > { %2927 = vmatmul.mubr.msk.f32.gmra.mxu0 %vm260_vm0, %v389_v52  ;;  %v378_v55 = vmul.f32 %v2638_v22, %v365_v53 }
 0x150   : > { %2929 = vmatprep.mubr.msk.f32.mxu0 %vm260_vm0, %v390_v54 }
 0x151   : > { %v391_v39 = vadd.f32 %v2639_v25, %v378_v55 }
 0x153   : > { %2930 = vmatmul.mubr.msk.f32.gmra.mxu0 %vm260_vm0, %v391_v39 }
 0x207   : > { %v2922_v48 = vpop.f32.mrf.mxu0 }
 0x208   : > { %v3545_v4 = vadd.f32 %v2922_v48, %v2640_v56 }
 0x209   : > { %v493_v57 = vpop.f32.mrf.mxu0 }
 0x20a   : > { %v3530_v58 = vadd.f32 %v2640_v56, %v493_v57 }
 0x20b   : > { %v2925_v59 = vpop.f32.mrf.mxu0 }
 0x20c   : > { %2948 = vmatprep.mubr.msk.f32.mxu1 %vm604_vm1, %v3530_v58  ;;  %v3539_v2 = vadd.f32 %v2925_v59, %v2640_v56 }
 0x20d   : > { %v503_v49 = vpop.f32.mrf.mxu0 }
 0x20e   : > { %v3552_v6 = vadd.f32 %v2640_v56, %v503_v49 }
 0x20f   : > { %v2928_v60 = vpop.f32.mrf.mxu0 }
 0x210   : > { %v3542_v3 = vadd.f32 %v2928_v60, %v2640_v56 }
 0x211   : > { %v513_v61 = vpop.f32.mrf.mxu0 }
 0x212   : > { %v3548_v5 = vadd.f32 %v2640_v56, %v513_v61 }
 0x213   : > { %v2931_v62 = vpop.f32.mrf.mxu0 }
 0x214   : > { %v3534_v63 = vadd.f32 %v2931_v62, %v2640_v56 }
 0x215   : > { %v523_v0 = vpop.f32.mrf.mxu0 }
 0x216   : > { %v3536_v1 = vadd.f32 %v2640_v56, %v523_v0  ;;  %554 = vrot.lane.b32.xlu0 %v3534_v63, %s3376_s17 }
 0x218   : > { %552 = vrot.lane.b32.xlu1 %v3536_v1, %s3376_s17 }
 0x21a   : > { %546 = vrot.lane.b32.xlu0 %v3539_v2, %s3376_s17 }
 0x21c   : > { %550 = vrot.lane.b32.xlu1 %v3542_v3, %s3376_s17 }
 0x21e   : > { %542 = vrot.lane.b32.xlu0 %v3545_v4, %s3376_s17 }
 0x220   : > { %548 = vrot.lane.b32.xlu1 %v3548_v5, %s3376_s17 }
 0x222   : > { %570 = vrot.lane.b32.xlu0 %v3534_v63, %s3377_s18 }
 0x224   : > { %544 = vrot.lane.b32.xlu1 %v3552_v6, %s3376_s17 }
 0x226   : > { %566 = vrot.lane.b32.xlu0 %v3542_v3, %s3377_s18 }
 0x228   : > { %540 = vrot.lane.b32.xlu1 %v3530_v58, %s3376_s17 }
 0x22a   : > { %568 = vrot.lane.b32.xlu0 %v3536_v1, %s3377_s18 }
 0x22c   : > { %586 = vrot.lane.b32.xlu1 %v3534_v63, %s3378_s19 }
 0x22e   : > { %564 = vrot.lane.b32.xlu0 %v3548_v5, %s3377_s18 }
 0x230   : > { %582 = vrot.lane.b32.xlu1 %v3542_v3, %s3378_s19 }
 0x232   : > { %562 = vrot.lane.b32.xlu0 %v3539_v2, %s3377_s18 }
 0x234   : > { %584 = vrot.lane.b32.xlu1 %v3536_v1, %s3378_s19 }
 0x236   : > { %560 = vrot.lane.b32.xlu0 %v3552_v6, %s3377_s18 }
 0x238   : > { %580 = vrot.lane.b32.xlu1 %v3548_v5, %s3378_s19 }
 0x23a   : > { %558 = vrot.lane.b32.xlu0 %v3545_v4, %s3377_s18 }
 0x23c   : > { %578 = vrot.lane.b32.xlu1 %v3539_v2, %s3378_s19 }
 0x23e   : > { %602 = vrot.lane.b32.xlu0 %v3534_v63, %s3379_s20 }
 0x240   : > { %576 = vrot.lane.b32.xlu1 %v3552_v6, %s3378_s19 }
 0x242   : > { %556 = vrot.lane.b32.xlu0 %v3530_v58, %s3377_s18 }
 0x244   : > { %574 = vrot.lane.b32.xlu1 %v3545_v4, %s3378_s19 }
 0x246   : > { %600 = vrot.lane.b32.xlu0 %v3536_v1, %s3379_s20 }
 0x248   : > { %572 = vrot.lane.b32.xlu1 %v3530_v58, %s3378_s19 }
 0x24a   : > { %598 = vrot.lane.b32.xlu0 %v3542_v3, %s3379_s20 }
 0x24e   : > { %596 = vrot.lane.b32.xlu0 %v3548_v5, %s3379_s20 }
 0x252   : > { %594 = vrot.lane.b32.xlu0 %v3539_v2, %s3379_s20 }
 0x256   : > { %592 = vrot.lane.b32.xlu0 %v3552_v6, %s3379_s20 }
 0x25a   : > { %590 = vrot.lane.b32.xlu0 %v3545_v4, %s3379_s20 }
 0x25e   : > { %588 = vrot.lane.b32.xlu0 %v3530_v58, %s3379_s20 }
 0x288   : > { %v3588_v7 = vpop.permute.xlu0 %554 }
 0x289   : > { %756 = vrot.lane.b32.xlu1 %v3588_v7, %s3379_s20 }
 0x28a   : > { %v3592_v8 = vpop.permute.xlu1 %552 }
 0x28c   : > { %v3594_v9 = vpop.permute.xlu0 %546 }
 0x28d   : > { %754 = vrot.lane.b32.xlu1 %v3592_v8, %s3379_s20 }
 0x28e   : > { %v3598_v10 = vpop.permute.xlu1 %550 }
 0x290   : > { %v3600_v11 = vpop.permute.xlu0 %542 }
 0x291   : > { %752 = vrot.lane.b32.xlu1 %v3598_v10, %s3379_s20 }
 0x292   : > { %v3604_v12 = vpop.permute.xlu1 %548 }
 0x294   : > { %v3606_v13 = vpop.permute.xlu0 %570 }
 0x295   : > { %909 = vrot.lane.b32.xlu0 %v3606_v13, %s3379_s20  ;;  %750 = vrot.lane.b32.xlu1 %v3604_v12, %s3379_s20 }
 0x296   : > { %v3612_v14 = vpop.permute.xlu1 %544 }
 0x298   : > { %v3614_v15 = vpop.permute.xlu0 %566 }
 0x299   : > { %748 = vrot.lane.b32.xlu1 %v3594_v9, %s3379_s20 }
 0x29a   : > { %v3618_v16 = vpop.permute.xlu1 %540 }
 0x29b   : > { %2976 = vmatprep.mubr.msk.f32.mxu0 %vm604_vm1, %v3618_v16 }
 0x29c   : > { %v3622_v17 = vpop.permute.xlu0 %568 }
 0x29d   : > { %907 = vrot.lane.b32.xlu0 %v3622_v17, %s3379_s20  ;;  %746 = vrot.lane.b32.xlu1 %v3612_v14, %s3379_s20 }
 0x29e   : > { %v3628_v18 = vpop.permute.xlu1 %586 }
 0x2a0   : > { %v3630_v19 = vpop.permute.xlu0 %564 }
 0x2a1   : > { %905 = vrot.lane.b32.xlu0 %v3614_v15, %s3379_s20  ;;  %744 = vrot.lane.b32.xlu1 %v3600_v11, %s3379_s20 }
 0x2a2   : > { %v3636_v22 = vpop.permute.xlu1 %582 }
 0x2a4   : > { %v3638_v23 = vpop.permute.xlu0 %562 }
 0x2a5   : > { %903 = vrot.lane.b32.xlu0 %v3630_v19, %s3379_s20  ;;  %742 = vrot.lane.b32.xlu1 %v3618_v16, %s3379_s20 }
 0x2a6   : > { %v3644_v24 = vpop.permute.xlu1 %584 }
 0x2a8   : > { %v3646_v25 = vpop.permute.xlu0 %560 }
 0x2a9   : > { %901 = vrot.lane.b32.xlu0 %v3638_v23, %s3379_s20  ;;  %1062 = vrot.lane.b32.xlu1 %v3628_v18, %s3379_s20 }
 0x2aa   : > { %v3654_v27 = vpop.permute.xlu1 %580 }
 0x2ac   : > { %v3652_v26 = vpop.permute.xlu0 %558 }
 0x2ad   : > { %899 = vrot.lane.b32.xlu0 %v3646_v25, %s3379_s20  ;;  %1060 = vrot.lane.b32.xlu1 %v3644_v24, %s3379_s20 }
 0x2ae   : > { %v3666_v31 = vpop.permute.xlu1 %578 }
 0x2b0   : > { %v603_v30 = vpop.permute.xlu0 %602 }
 0x2b1   : > { %897 = vrot.lane.b32.xlu0 %v3652_v26, %s3379_s20  ;;  %2932 = vmatprep.subr.msk.mxu1 %vm604_vm1, %v603_v30 }
 0x2b2   : > { %1058 = vrot.lane.b32.xlu1 %v3636_v22, %s3379_s20  ;;  %2933 = vmatpush3.xpose.msk.msra.mxu1 %vm604_vm1, %v603_v30  ;;  %v3674_v34 = vpop.permute.xlu1 %576 }
 0x2b4   : > { %v3668_v32 = vpop.permute.xlu0 %556 }
 0x2b5   : > { %895 = vrot.lane.b32.xlu0 %v3668_v32, %s3379_s20 }
 0x2b6   : > { %1056 = vrot.lane.b32.xlu1 %v3654_v27, %s3379_s20  ;;  %v3688_v36 = vpop.permute.xlu1 %574 }
 0x2b8   : > { %v601_v33 = vpop.permute.xlu0 %600 }
 0x2b9   : > { %1721 = vrot.lane.b32.xlu0 %v3588_v7, %s3380_s24  ;;  %2934 = vmatprep.subr.msk.mxu1 %vm604_vm1, %v601_v33 }
 0x2ba   : > { %1054 = vrot.lane.b32.xlu1 %v3666_v31, %s3379_s20  ;;  %2935 = vmatpush3.xpose.msk.msra.mxu1 %vm604_vm1, %v601_v33  ;;  %v3696_v40 = vpop.permute.xlu1 %572 }
 0x2bc   : > { %v599_v35 = vpop.permute.xlu0 %598 }
 0x2bd   : > { %2936 = vmatprep.subr.msk.mxu1 %vm604_vm1, %v599_v35  ;;  %1717 = vrot.lane.b32.xlu0 %v3598_v10, %s3380_s24 }
 0x2be   : > { %1052 = vrot.lane.b32.xlu1 %v3674_v34, %s3379_s20  ;;  %2937 = vmatpush3.xpose.msk.msra.mxu1 %vm604_vm1, %v599_v35 }
 0x2c0   : > { %v597_v37 = vpop.permute.xlu0 %596 }
 0x2c1   : > { %2938 = vmatprep.subr.msk.mxu1 %vm604_vm1, %v597_v37  ;;  %1715 = vrot.lane.b32.xlu0 %v3604_v12, %s3380_s24 }
 0x2c2   : > { %1050 = vrot.lane.b32.xlu1 %v3688_v36, %s3379_s20  ;;  %2939 = vmatpush3.xpose.msk.msra.mxu1 %vm604_vm1, %v597_v37 }
 0x2c4   : > { %v595_v20 = vpop.permute.xlu0 %594 }
 0x2c5   : > { %2940 = vmatprep.subr.msk.mxu1 %vm604_vm1, %v595_v20  ;;  %1713 = vrot.lane.b32.xlu0 %v3594_v9, %s3380_s24 }
 0x2c6   : > { %1048 = vrot.lane.b32.xlu1 %v3696_v40, %s3379_s20  ;;  %2941 = vmatpush3.xpose.msk.msra.mxu1 %vm604_vm1, %v595_v20  ;;  %s4446_s20 = scalar_lea.vmem %s4479_s6, %s2758_s23 }
 0x2c8   : > { %v593_v41 = vpop.permute.xlu0 %592 }
 0x2c9   : > { %2942 = vmatprep.subr.msk.mxu1 %vm604_vm1, %v593_v41  ;;  %1711 = vrot.lane.b32.xlu0 %v3612_v14, %s3380_s24 }
 0x2ca   : > { %1568 = vrot.lane.b32.xlu1 %v3534_v63, %s3380_s24  ;;  %2943 = vmatpush3.xpose.msk.msra.mxu1 %vm604_vm1, %v593_v41 }
 0x2cc   : > { %v591_v42 = vpop.permute.xlu0 %590 }
 0x2cd   : > { %2944 = vmatprep.subr.msk.mxu1 %vm604_vm1, %v591_v42  ;;  %1709 = vrot.lane.b32.xlu0 %v3600_v11, %s3380_s24 }
 0x2ce   : > { %1566 = vrot.lane.b32.xlu1 %v3536_v1, %s3380_s24  ;;  %2945 = vmatpush3.xpose.msk.msra.mxu1 %vm604_vm1, %v591_v42 }
 0x2d0   : > { %v589_v43 = vpop.permute.xlu0 %588 }
 0x2d1   : > { %2946 = vmatprep.subr.msk.mxu1 %vm604_vm1, %v589_v43  ;;  %1707 = vrot.lane.b32.xlu0 %v3618_v16, %s3380_s24 }
 0x2d2   : > { %1564 = vrot.lane.b32.xlu1 %v3542_v3, %s3380_s24  ;;  %2947 = vmatpush3.xpose.msk.msra.mxu1 %vm604_vm1, %v589_v43 }
 0x2d5   : > { %2949 = vmatmul.mubr.msk.f32.vlgmr.msra.gmra.mxu1 %vm604_vm1, %v3545_v4  ;;  %2027 = vrot.lane.b32.xlu0 %v3628_v18, %s3380_s24 }
 0x2d6   : > { %1562 = vrot.lane.b32.xlu1 %v3548_v5, %s3380_s24  ;;  %2951 = vmatprep.mubr.msk.f32.mxu1 %vm604_vm1, %v3552_v6 }
 0x2d9   : > { %2952 = vmatmul.mubr.msk.f32.gmra.mxu1 %vm604_vm1, %v3539_v2  ;;  %1868 = vrot.lane.b32.xlu0 %v3630_v19, %s3380_s24 }
 0x2da   : > { %1560 = vrot.lane.b32.xlu1 %v3539_v2, %s3380_s24  ;;  %2954 = vmatprep.mubr.msk.f32.mxu1 %vm604_vm1, %v3548_v5 }
 0x2dd   : > { %2955 = vmatmul.mubr.msk.f32.gmra.mxu1 %vm604_vm1, %v3542_v3  ;;  %1866 = vrot.lane.b32.xlu0 %v3638_v23, %s3380_s24 }
 0x2de   : > { %1558 = vrot.lane.b32.xlu1 %v3552_v6, %s3380_s24  ;;  %2957 = vmatprep.mubr.msk.f32.mxu1 %vm604_vm1, %v3536_v1 }
 0x2e1   : > { %2958 = vmatmul.mubr.msk.f32.gmra.mxu1 %vm604_vm1, %v3534_v63  ;;  %1864 = vrot.lane.b32.xlu0 %v3646_v25, %s3380_s24 }
 0x2e2   : > { %1556 = vrot.lane.b32.xlu1 %v3545_v4, %s3380_s24  ;;  %3004 = vmatprep.mubr.msk.f32.mxu1 %vm604_vm1, %v3668_v32 }
 0x2e5   : > { %1719 = vrot.lane.b32.xlu0 %v3592_v8, %s3380_s24 }
 0x2e6   : > { %1554 = vrot.lane.b32.xlu1 %v3530_v58, %s3380_s24 }
 0x2ea   : > { %1874 = vrot.lane.b32.xlu1 %v3606_v13, %s3380_s24 }
 0x2ee   : > { %1870 = vrot.lane.b32.xlu1 %v3614_v15, %s3380_s24 }
 0x2f2   : > { %2023 = vrot.lane.b32.xlu1 %v3636_v22, %s3380_s24 }
 0x2f6   : > { %2021 = vrot.lane.b32.xlu1 %v3654_v27, %s3380_s24 }
 0x2fa   : > { %2019 = vrot.lane.b32.xlu1 %v3666_v31, %s3380_s24 }
 0x2fb   : > { %v757_v44 = vpop.permute.xlu1 %756 }
 0x2fc   : > { %2960 = vmatprep.subr.msk.mxu0 %vm604_vm1, %v757_v44 }
 0x2fd   : > { %2961 = vmatpush3.xpose.msk.msra.mxu0 %vm604_vm1, %v757_v44 }
 0x2fe   : > { %2017 = vrot.lane.b32.xlu1 %v3674_v34, %s3380_s24 }
 0x2ff   : > { %v755_v28 = vpop.permute.xlu1 %754 }
 0x300   : > { %2962 = vmatprep.subr.msk.mxu0 %vm604_vm1, %v755_v28 }
 0x301   : > { %2963 = vmatpush3.xpose.msk.msra.mxu0 %vm604_vm1, %v755_v28 }
 0x302   : > { %1872 = vrot.lane.b32.xlu1 %v3622_v17, %s3380_s24 }
 0x303   : > { %v753_v21 = vpop.permute.xlu1 %752 }
 0x304   : > { %2964 = vmatprep.subr.msk.mxu0 %vm604_vm1, %v753_v21 }
 0x305   : > { %2965 = vmatpush3.xpose.msk.msra.mxu0 %vm604_vm1, %v753_v21 }
 0x306   : > { %2025 = vrot.lane.b32.xlu1 %v3644_v24, %s3380_s24 }
 0x307   : > { %v910_v45 = vpop.permute.xlu0 %909  ;;  %v751_v46 = vpop.permute.xlu1 %750 }
 0x308   : > { %2966 = vmatprep.subr.msk.mxu0 %vm604_vm1, %v751_v46  ;;  %2988 = vmatprep.subr.msk.mxu1 %vm604_vm1, %v910_v45 }
 0x309   : > { %2967 = vmatpush3.xpose.msk.msra.mxu0 %vm604_vm1, %v751_v46  ;;  %2989 = vmatpush3.xpose.msk.msra.mxu1 %vm604_vm1, %v910_v45 }
 0x30b   : > { %v749_v47 = vpop.permute.xlu1 %748 }
 0x30c   : > { %2968 = vmatprep.subr.msk.mxu0 %vm604_vm1, %v749_v47 }
 0x30d   : > { %2969 = vmatpush3.xpose.msk.msra.mxu0 %vm604_vm1, %v749_v47 }
 0x30f   : > { %v908_v50 = vpop.permute.xlu0 %907  ;;  %v747_v29 = vpop.permute.xlu1 %746 }
 0x310   : > { %2970 = vmatprep.subr.msk.mxu0 %vm604_vm1, %v747_v29  ;;  %2990 = vmatprep.subr.msk.mxu1 %vm604_vm1, %v908_v50 }
 0x311   : > { %2971 = vmatpush3.xpose.msk.msra.mxu0 %vm604_vm1, %v747_v29  ;;  %2991 = vmatpush3.xpose.msk.msra.mxu1 %vm604_vm1, %v908_v50 }
 0x313   : > { %v906_v51 = vpop.permute.xlu0 %905  ;;  %v745_v38 = vpop.permute.xlu1 %744 }
 0x314   : > { %2972 = vmatprep.subr.msk.mxu0 %vm604_vm1, %v745_v38  ;;  %2992 = vmatprep.subr.msk.mxu1 %vm604_vm1, %v906_v51 }
 0x315   : > { %2973 = vmatpush3.xpose.msk.msra.mxu0 %vm604_vm1, %v745_v38  ;;  %2993 = vmatpush3.xpose.msk.msra.mxu1 %vm604_vm1, %v906_v51 }
 0x317   : > { %v904_v52 = vpop.permute.xlu0 %903  ;;  %v743_v53 = vpop.permute.xlu1 %742 }
 0x318   : > { %2974 = vmatprep.subr.msk.mxu0 %vm604_vm1, %v743_v53  ;;  %2994 = vmatprep.subr.msk.mxu1 %vm604_vm1, %v904_v52 }
 0x319   : > { %2975 = vmatpush3.xpose.msk.msra.mxu0 %vm604_vm1, %v743_v53  ;;  %2995 = vmatpush3.xpose.msk.msra.mxu1 %vm604_vm1, %v904_v52 }
 0x31b   : > { %v902_v54 = vpop.permute.xlu0 %901  ;;  %v1063_v55 = vpop.permute.xlu1 %1062 }
 0x31c   : > { %2977 = vmatmul.mubr.msk.f32.vlgmr.msra.gmra.mxu0 %vm604_vm1, %v3600_v11  ;;  %2996 = vmatprep.subr.msk.mxu1 %vm604_vm1, %v902_v54 }
 0x31d   : > { %3016 = vmatprep.subr.msk.mxu0 %vm604_vm1, %v1063_v55  ;;  %2979 = vmatprep.mubr.msk.f32.mxu0 %vm604_vm1, %v3612_v14 }
 0x31e   : > { %2997 = vmatpush3.xpose.msk.msra.mxu1 %vm604_vm1, %v902_v54  ;;  %3017 = vmatpush3.xpose.msk.msra.mxu0 %vm604_vm1, %v1063_v55 }
 0x31f   : > { %v900_v39 = vpop.permute.xlu0 %899  ;;  %v1061_v48 = vpop.permute.xlu1 %1060 }
 0x320   : > { %2980 = vmatmul.mubr.msk.f32.gmra.mxu0 %vm604_vm1, %v3594_v9  ;;  %2998 = vmatprep.subr.msk.mxu1 %vm604_vm1, %v900_v39 }
 0x321   : > { %3018 = vmatprep.subr.msk.mxu0 %vm604_vm1, %v1061_v48  ;;  %2982 = vmatprep.mubr.msk.f32.mxu0 %vm604_vm1, %v3604_v12 }
 0x322   : > { %2999 = vmatpush3.xpose.msk.msra.mxu1 %vm604_vm1, %v900_v39  ;;  %3019 = vmatpush3.xpose.msk.msra.mxu0 %vm604_vm1, %v1061_v48 }
 0x323   : > { %v898_v56 = vpop.permute.xlu0 %897 }
 0x324   : > { %v1059_v57 = vpop.permute.xlu1 %1058  ;;  %2983 = vmatmul.mubr.msk.f32.gmra.mxu0 %vm604_vm1, %v3598_v10  ;;  %3000 = vmatprep.subr.msk.mxu1 %vm604_vm1, %v898_v56 }
 0x325   : > { %3020 = vmatprep.subr.msk.mxu0 %vm604_vm1, %v1059_v57  ;;  %2985 = vmatprep.mubr.msk.f32.mxu0 %vm604_vm1, %v3592_v8 }
 0x326   : > { %3001 = vmatpush3.xpose.msk.msra.mxu1 %vm604_vm1, %v898_v56  ;;  %3021 = vmatpush3.xpose.msk.msra.mxu0 %vm604_vm1, %v1059_v57 }
 0x327   : > { %v896_v58 = vpop.permute.xlu0 %895 }
 0x328   : > { %v1057_v59 = vpop.permute.xlu1 %1056  ;;  %2986 = vmatmul.mubr.msk.f32.gmra.mxu0 %vm604_vm1, %v3588_v7  ;;  %3002 = vmatprep.subr.msk.mxu1 %vm604_vm1, %v896_v58 }
 0x329   : > { %3022 = vmatprep.subr.msk.mxu0 %vm604_vm1, %v1057_v59  ;;  %3032 = vmatprep.mubr.msk.f32.mxu0 %vm604_vm1, %v3696_v40 }
 0x32a   : > { %3003 = vmatpush3.xpose.msk.msra.mxu1 %vm604_vm1, %v896_v58  ;;  %3023 = vmatpush3.xpose.msk.msra.mxu0 %vm604_vm1, %v1057_v59 }
 0x32b   : > { %v1722_v49 = vpop.permute.xlu0 %1721 }
 0x32c   : > { %v1055_v60 = vpop.permute.xlu1 %1054 }
 0x32d   : > { %3005 = vmatmul.mubr.msk.f32.vlgmr.msra.gmra.mxu1 %vm604_vm1, %v3652_v26  ;;  %3024 = vmatprep.subr.msk.mxu0 %vm604_vm1, %v1055_v60 }
 0x32e   : > { %3007 = vmatprep.mubr.msk.f32.mxu1 %vm604_vm1, %v3646_v25  ;;  %3025 = vmatpush3.xpose.msk.msra.mxu0 %vm604_vm1, %v1055_v60 }
 0x32f   : > { %v1718_v61 = vpop.permute.xlu0 %1717 }
 0x330   : > { %v1053_v62 = vpop.permute.xlu1 %1052 }
 0x331   : > { %3008 = vmatmul.mubr.msk.f32.gmra.mxu1 %vm604_vm1, %v3638_v23  ;;  %3026 = vmatprep.subr.msk.mxu0 %vm604_vm1, %v1053_v62 }
 0x332   : > { %3010 = vmatprep.mubr.msk.f32.mxu1 %vm604_vm1, %v3630_v19  ;;  %3027 = vmatpush3.xpose.msk.msra.mxu0 %vm604_vm1, %v1053_v62 }
 0x333   : > { %v1716_v63 = vpop.permute.xlu0 %1715 }
 0x334   : > { %v1051_v0 = vpop.permute.xlu1 %1050 }
 0x335   : > { %3011 = vmatmul.mubr.msk.f32.gmra.mxu1 %vm604_vm1, %v3614_v15  ;;  %3028 = vmatprep.subr.msk.mxu0 %vm604_vm1, %v1051_v0 }
 0x336   : > { %3013 = vmatprep.mubr.msk.f32.mxu1 %vm604_vm1, %v3622_v17  ;;  %3029 = vmatpush3.xpose.msk.msra.mxu0 %vm604_vm1, %v1051_v0 }
 0x337   : > { %v1714_v1 = vpop.permute.xlu0 %1713 }
 0x338   : > { %v1049_v2 = vpop.permute.xlu1 %1048 }
 0x339   : > { %3014 = vmatmul.mubr.msk.f32.gmra.mxu1 %vm604_vm1, %v3606_v13  ;;  %3030 = vmatprep.subr.msk.mxu0 %vm604_vm1, %v1049_v2 }
 0x33a   : > { %3031 = vmatpush3.xpose.msk.msra.mxu0 %vm604_vm1, %v1049_v2 }
 0x33b   : > { %3072 = vmatprep.subr.mxu0 %v1722_v49  ;;  %v1712_v3 = vpop.permute.xlu0 %1711 }
 0x33c   : > { %v1569_v4 = vpop.permute.xlu1 %1568 }
 0x33d   : > { %3033 = vmatmul.mubr.msk.f32.vlgmr.msra.gmra.mxu0 %vm604_vm1, %v3688_v36  ;;  %3044 = vmatprep.subr.mxu1 %v1569_v4 }
 0x33e   : > { %3035 = vmatprep.mubr.msk.f32.mxu0 %vm604_vm1, %v3674_v34  ;;  %3045 = vmatpush3.msra.mxu1 %v1569_v4 }
 0x33f   : > { %3073 = vmatpush3.msra.mxu0 %v1722_v49  ;;  %v1710_v5 = vpop.permute.xlu0 %1709 }
 0x340   : > { %v1567_v6 = vpop.permute.xlu1 %1566 }
 0x341   : > { %3036 = vmatmul.mubr.msk.f32.gmra.mxu0 %vm604_vm1, %v3666_v31  ;;  %3046 = vmatprep.subr.mxu1 %v1567_v6 }
 0x342   : > { %3038 = vmatprep.mubr.msk.f32.mxu0 %vm604_vm1, %v3654_v27  ;;  %3047 = vmatpush3.msra.mxu1 %v1567_v6 }
 0x343   : > { %v1708_v7 = vpop.permute.xlu0 %1707 }
 0x344   : > { %v1565_v8 = vpop.permute.xlu1 %1564 }
 0x345   : > { %3039 = vmatmul.mubr.msk.f32.gmra.mxu0 %vm604_vm1, %v3636_v22  ;;  %3048 = vmatprep.subr.mxu1 %v1565_v8 }
 0x346   : > { %3041 = vmatprep.mubr.msk.f32.mxu0 %vm604_vm1, %v3644_v24  ;;  %3049 = vmatpush3.msra.mxu1 %v1565_v8 }
 0x347   : > { %v3864_v9 = vpop.permute.xlu0 %2027 }
 0x348   : > { %v1563_v10 = vpop.permute.xlu1 %1562 }
 0x349   : > { %3042 = vmatmul.mubr.msk.f32.gmra.mxu0 %vm604_vm1, %v3628_v18  ;;  %3050 = vmatprep.subr.mxu1 %v1563_v10 }
 0x34a   : > { %3051 = vmatpush3.msra.mxu1 %v1563_v10 }
 0x34b   : > { %v3868_v11 = vpop.permute.xlu0 %1868 }
 0x34c   : > { %v1561_v12 = vpop.permute.xlu1 %1560 }
 0x34d   : > { %3052 = vmatprep.subr.mxu1 %v1561_v12 }
 0x34e   : > { %3053 = vmatpush3.msra.mxu1 %v1561_v12 }
 0x34f   : > { %v3870_v13 = vpop.permute.xlu0 %1866 }
 0x350   : > { %v1559_v14 = vpop.permute.xlu1 %1558 }
 0x351   : > { %3054 = vmatprep.subr.mxu1 %v1559_v14 }
 0x352   : > { %3055 = vmatpush3.msra.mxu1 %v1559_v14 }
 0x353   : > { %v3872_v15 = vpop.permute.xlu0 %1864 }
 0x354   : > { %v1557_v16 = vpop.permute.xlu1 %1556 }
 0x355   : > { %3056 = vmatprep.subr.mxu1 %v1557_v16 }
 0x356   : > { %3057 = vmatpush3.msra.mxu1 %v1557_v16 }
 0x357   : > { %v1720_v17 = vpop.permute.xlu0 %1719 }
 0x358   : > { %v1555_v19 = vpop.permute.xlu1 %1554  ;;  %3074 = vmatprep.subr.mxu0 %v1720_v17 }
 0x359   : > { %3058 = vmatprep.subr.mxu1 %v1555_v19  ;;  %3075 = vmatpush3.msra.mxu0 %v1720_v17 }
 0x35a   : > { %3059 = vmatpush3.msra.mxu1 %v1555_v19  ;;  %3076 = vmatprep.subr.mxu0 %v1718_v61 }
 0x35b   : > { %3077 = vmatpush3.msra.mxu0 %v1718_v61 }
 0x35c   : > { %v3874_v18 = vpop.permute.xlu1 %1874  ;;  %3078 = vmatprep.subr.mxu0 %v1716_v63 }
 0x35d   : > { %3100 = vmatprep.subr.mxu1 %v3874_v18  ;;  %3079 = vmatpush3.msra.mxu0 %v1716_v63 }
 0x35e   : > { %3080 = vmatprep.subr.mxu0 %v1714_v1 }
 0x35f   : > { %3081 = vmatpush3.msra.mxu0 %v1714_v1 }
 0x360   : > { %3082 = vmatprep.subr.mxu0 %v1712_v3  ;;  %v3946_v59 = vpop.permute.xlu1 %1870 }
 0x361   : > { %3083 = vmatpush3.msra.mxu0 %v1712_v3 }
 0x362   : > { %3084 = vmatprep.subr.mxu0 %v1710_v5 }
 0x363   : > { %3085 = vmatpush3.msra.mxu0 %v1710_v5 }
 0x364   : > { %3086 = vmatprep.subr.mxu0 %v1708_v7  ;;  %v3962_v2 = vpop.permute.xlu1 %2023 }
 0x365   : > { %3087 = vmatpush3.msra.mxu0 %v1708_v7 }
 0x366   : > { %3128 = vmatprep.subr.mxu0 %v3864_v9 }
 0x368   : > { %v3974_v8 = vpop.permute.xlu1 %2021 }
 0x395   : > { %v3878_v22 = vpop.f32.mrf.mxu1 }
 0x396   : > { %v1205_v23 = vsel %vm1201_vm2, %v3878_v22, -inf }
 0x397   : > { %v3882_v24 = vpop.f32.mrf.mxu1  ;;  %1206 = vmax.xlane.f32.xlu1 %v1205_v23  ;;  %v3988_v23 = vpop.permute.xlu1 %2019 }
 0x398   : > { %v1202_v25 = vsel %vm1201_vm2, %v3882_v24, -inf }
 0x399   : > { %v3886_v27 = vpop.f32.mrf.mxu1  ;;  %1203 = vmax.xlane.f32.xlu0 %v1202_v25 }
 0x39a   : > { %v1211_v30 = vsel %vm1201_vm2, %v3886_v27, -inf }
 0x39b   : > { %v3890_v31 = vpop.f32.mrf.mxu1  ;;  %1212 = vmax.xlane.f32.xlu1 %v1211_v30 }
 0x39c   : > { %v1208_v33 = vsel %vm1201_vm2, %v3890_v31, -inf }
 0x39d   : > { %v3894_v34 = vpop.f32.mrf.mxu1  ;;  %1209 = vmax.xlane.f32.xlu0 %v1208_v33 }
 0x39e   : > { %v1217_v35 = vsel %vm1201_vm2, %v3894_v34, -inf }
 0x39f   : > { %v3898_v37 = vpop.f32.mrf.mxu1  ;;  %1218 = vmax.xlane.f32.xlu1 %v1217_v35 }
 0x3a0   : > { %v1214_v20 = vsel %vm1201_vm2, %v3898_v37, -inf }
 0x3a1   : > { %v3902_v41 = vpop.f32.mrf.mxu1  ;;  %1215 = vmax.xlane.f32.xlu0 %v1214_v20  ;;  %v3998_v20 = vpop.permute.xlu1 %2017 }
 0x3a2   : > { %v1223_v42 = vsel %vm1201_vm2, %v3902_v41, -inf }
 0x3a3   : > { %v3906_v43 = vpop.f32.mrf.mxu1  ;;  %1224 = vmax.xlane.f32.xlu1 %v1223_v42 }
 0x3a4   : > { %v1220_v44 = vsel %vm1201_vm2, %v3906_v43, -inf }
 0x3a5   : > { %1221 = vmax.xlane.f32.xlu0 %v1220_v44 }
 0x3dc   : > { %v3910_v28 = vpop.f32.mrf.mxu0 }
 0x3dd   : > { %v1229_v21 = vsel %vm1201_vm2, %v3910_v28, -inf }
 0x3de   : > { %1230 = vmax.xlane.f32.xlu0 %v1229_v21  ;;  %v3914_v45 = vpop.f32.mrf.mxu0 }
 0x3df   : > { %v1226_v46 = vsel %vm1201_vm2, %v3914_v45, -inf }
 0x3e0   : > { %v3918_v47 = vpop.f32.mrf.mxu0 }
 0x3e1   : > { %v1235_v55 = vsel %vm1201_vm2, %v3918_v47, -inf }
 0x3e2   : > { %1227 = vmax.xlane.f32.xlu0 %v1226_v46  ;;  %v3920_v50 = vpop.f32.mrf.mxu0 }
 0x3e3   : > { %v1232_v48 = vsel %vm1201_vm2, %v3920_v50, -inf }
 0x3e4   : > { %v3926_v38 = vpop.f32.mrf.mxu0 }
 0x3e5   : > { %v1241_v61 = vsel %vm1201_vm2, %v3926_v38, -inf }
 0x3e6   : > { %v3936_v39 = vpop.f32.mrf.mxu0 }
 0x3e7   : > { %v1238_v63 = vsel %vm1201_vm2, %v3936_v39, -inf }
 0x3e8   : > { %v3944_v58 = vpop.f32.mrf.mxu0 }
 0x3e9   : > { %v1247_v7 = vsel %vm1201_vm2, %v3944_v58, -inf }
 0x3ea   : > { %v3954_v62 = vpop.f32.mrf.mxu0 }
 0x3eb   : > { %v1244_v10 = vsel %vm1201_vm2, %v3954_v62, -inf }
 0x3ed   : > { %v3922_v29 = vpop.f32.mrf.mxu1 }
 0x3ee   : > { %v1253_v51 = vsel %vm1201_vm2, %v3922_v29, -inf }
 0x3ef   : > { %v3928_v52 = vpop.f32.mrf.mxu1  ;;  %1254 = vmax.xlane.f32.xlu1 %v1253_v51  ;;  %v4008_v51 = vpop.permute.xlu1 %1872 }
 0x3f0   : > { %v1250_v53 = vsel %vm1201_vm2, %v3928_v52, -inf }
 0x3f1   : > { %v3932_v54 = vpop.f32.mrf.mxu1  ;;  %1251 = vmax.xlane.f32.xlu0 %v1250_v53 }
 0x3f2   : > { %v1259_v57 = vsel %vm1201_vm2, %v3932_v54, -inf }
 0x3f3   : > { %1236 = vmax.xlane.f32.xlu1 %v1235_v55  ;;  %v3940_v56 = vpop.f32.mrf.mxu1  ;;  %v4010_v53 = vpop.permute.xlu1 %2025 }
 0x3f4   : > { %v1256_v49 = vsel %vm1201_vm2, %v3940_v56, -inf }
 0x3f5   : > { %1233 = vmax.xlane.f32.xlu0 %v1232_v48  ;;  %v3950_v60 = vpop.f32.mrf.mxu1 }
 0x3f6   : > { %v1265_v3 = vsel %vm1201_vm2, %v3950_v60, -inf }
 0x3f7   : > { %1260 = vmax.xlane.f32.xlu1 %v1259_v57  ;;  %v3958_v0 = vpop.f32.mrf.mxu1 }
 0x3f8   : > { %v1262_v4 = vsel %vm1201_vm2, %v3958_v0, -inf }
 0x3f9   : > { %1257 = vmax.xlane.f32.xlu0 %v1256_v49  ;;  %v3968_v5 = vpop.f32.mrf.mxu1 }
 0x3fa   : > { %v1271_v16 = vsel %vm1201_vm2, %v3968_v5, -inf }
 0x3fb   : > { %1242 = vmax.xlane.f32.xlu1 %v1241_v61  ;;  %v3978_v12 = vpop.f32.mrf.mxu1 }
 0x3fc   : > { %v1268_v17 = vsel %vm1201_vm2, %v3978_v12, -inf }
 0x3fd   : > { %1239 = vmax.xlane.f32.xlu0 %v1238_v63  ;;  %v3960_v1 = vpop.f32.mrf.mxu0 }
 0x3fe   : > { %v1277_v25 = vsel %vm1201_vm2, %v3960_v1, -inf }
 0x3ff   : > { %1266 = vmax.xlane.f32.xlu1 %v1265_v3  ;;  %v3970_v6 = vpop.f32.mrf.mxu0 }
 0x400   : > { %v1274_v30 = vsel %vm1201_vm2, %v3970_v6, -inf }
 0x401   : > { %1263 = vmax.xlane.f32.xlu0 %v1262_v4  ;;  %v3980_v14 = vpop.f32.mrf.mxu0 }
 0x402   : > { %v1283_v35 = vsel %vm1201_vm2, %v3980_v14, -inf }
 0x403   : > { %1248 = vmax.xlane.f32.xlu1 %v1247_v7  ;;  %v3986_v19 = vpop.f32.mrf.mxu0 }
 0x404   : > { %v1280_v42 = vsel %vm1201_vm2, %v3986_v19, -inf }
 0x405   : > { %1245 = vmax.xlane.f32.xlu0 %v1244_v10  ;;  %v3994_v33 = vpop.f32.mrf.mxu0 }
 0x406   : > { %v1289_v21 = vsel %vm1201_vm2, %v3994_v33, -inf }
 0x407   : > { %1272 = vmax.xlane.f32.xlu1 %v1271_v16  ;;  %v4002_v44 = vpop.f32.mrf.mxu0 }
 0x408   : > { %v1286_v46 = vsel %vm1201_vm2, %v4002_v44, -inf }
 0x409   : > { %1269 = vmax.xlane.f32.xlu0 %v1268_v17  ;;  %v4016_v4 = vpop.f32.mrf.mxu0 }
 0x40b   : > { %1278 = vmax.xlane.f32.xlu1 %v1277_v25  ;;  %v4024_v16 = vpop.f32.mrf.mxu0 }
 0x40c   : > { %v1292_v17 = vsel %vm1201_vm2, %v4024_v16, -inf }
 0x40d   : > { %1275 = vmax.xlane.f32.xlu0 %v1274_v30 }
 0x40f   : > { %1284 = vmax.xlane.f32.xlu1 %v1283_v35 }
 0x411   : > { %1281 = vmax.xlane.f32.xlu0 %v1280_v42 }
 0x413   : > { %1290 = vmax.xlane.f32.xlu1 %v1289_v21 }
 0x415   : > { %1287 = vmax.xlane.f32.xlu0 %v1286_v46 }
 0x420   : > { %v1207_v55 = vpop.xlane.xlu1 %1206 }
 0x421   : > { %v1299_v48 = vsub.f32 %v3878_v22, %v1207_v55 }
 0x422   : > { %v1204_v57 = vpop.xlane.xlu0 %1203 }
 0x423   : > { %v1332_v49 = vmul.f32 1.442695, %v1299_v48  ;;  %v1298_v61 = vsub.f32 %v3882_v24, %v1204_v57  ;;  %v1295_v24 = vsel %vm1201_vm2, %v4016_v4, -inf }
 0x424   : > { %v1213_v25 = vpop.xlane.xlu1 %1212 }
 0x425   : > { %3216 = vpow2.f32 %v1332_v49  ;;  %v1330_v63 = vmul.f32 1.442695, %v1298_v61  ;;  %v1301_v42 = vsub.f32 %v3886_v27, %v1213_v25 }
 0x426   : > { %v1210_v30 = vpop.xlane.xlu0 %1209 }
 0x427   : > { %3218 = vpow2.f32 %v1330_v63  ;;  %v1300_v46 = vsub.f32 %v3890_v31, %v1210_v30  ;;  %v1336_v55 = vmul.f32 1.442695, %v1301_v42 }
 0x428   : > { %v1219_v35 = vpop.xlane.xlu1 %1218 }
 0x429   : > { %v1303_v48 = vsub.f32 %v3894_v34, %v1219_v35  ;;  %v1334_v49 = vmul.f32 1.442695, %v1300_v46  ;;  %3220 = vpow2.f32 %v1336_v55 }
 0x42a   : > { %v1216_v21 = vpop.xlane.xlu0 %1215 }
 0x42b   : > { %v1302_v61 = vsub.f32 %v3898_v37, %v1216_v21  ;;  %3222 = vpow2.f32 %v1334_v49 }
 0x42c   : > { %v1225_v57 = vpop.xlane.xlu1 %1224 }
 0x42e   : > { %v1222_v63 = vpop.xlane.xlu0 %1221 }
 0x432   : > { %v4014_v3 = vpop.eup %3216 }
 0x433   : > { %v1397_v7 = vsel %vm1201_vm2, %v4014_v3, 0.0 }
 0x434   : > { %v4020_v10 = vpop.eup %3218  ;;  %1398 = vadd.xlane.f32.xlu1 %v1397_v7  ;;  %v1305_v7 = vsub.f32 %v3902_v41, %v1225_v57 }
 0x435   : > { %v1394_v22 = vsel %vm1201_vm2, %v4020_v10, 0.0 }
 0x436   : > { %1395 = vadd.xlane.f32.xlu0 %v1394_v22  ;;  %v1304_v22 = vsub.f32 %v3906_v43, %v1222_v63  ;;  %v1344_v27 = vmul.f32 1.442695, %v1305_v7 }
 0x438   : > { %1296 = vmax.xlane.f32.xlu1 %v1295_v24  ;;  %v1342_v31 = vmul.f32 1.442695, %v1304_v22 }
 0x43a   : > { %1293 = vmax.xlane.f32.xlu0 %v1292_v17  ;;  %v4041_v17 = vpop.eup %3220 }
 0x43b   : > { %v4043_v25 = vpop.eup %3222  ;;  %v1403_v41 = vsel %vm1201_vm2, %v4041_v17, 0.0 }
 0x43c   : > { %v1400_v43 = vsel %vm1201_vm2, %v4043_v25, 0.0 }
 0x449   : > { %2015 = vrot.lane.b32.xlu1 %v3688_v36, %s3380_s24  ;;  %v1340_v36 = vmul.f32 1.442695, %v1303_v48 }
 0x44b   : > { %3224 = vpow2.f32 %v1340_v36 }
 0x450   : > { %1862 = vrot.lane.b32.xlu0 %v3652_v26, %s3380_s24  ;;  %v1338_v26 = vmul.f32 1.442695, %v1302_v61 }
 0x452   : > { %3226 = vpow2.f32 %v1338_v26 }
 0x453   : > { %3228 = vpow2.f32 %v1344_v27 }
 0x454   : > { %3230 = vpow2.f32 %v1342_v31 }
 0x458   : > { %v4047_v30 = vpop.eup %3224 }
 0x45f   : > { %v4051_v35 = vpop.eup %3226 }
 0x460   : > { %v4055_v42 = vpop.eup %3228  ;;  %v1406_v21 = vsel %vm1201_vm2, %v4051_v35, 0.0 }
 0x461   : > { %v4059_v46 = vpop.eup %3230  ;;  %v1415_v48 = vsel %vm1201_vm2, %v4055_v42, 0.0 }
 0x462   : > { %v1412_v49 = vsel %vm1201_vm2, %v4059_v46, 0.0 }
 0x467   : > { %v1231_v34 = vpop.xlane.xlu0 %1230 }
 0x468   : > { %v1307_v24 = vsub.f32 %v3910_v28, %v1231_v34  ;;  %v1409_v28 = vsel %vm1201_vm2, %v4047_v30, 0.0 }
 0x46a   : > { %v1348_v37 = vmul.f32 1.442695, %v1307_v24 }
 0x46b   : > { %v1228_v55 = vpop.xlane.xlu0 %1227 }
 0x46c   : > { %3232 = vpow2.f32 %v1348_v37  ;;  %v1306_v57 = vsub.f32 %v3914_v45, %v1228_v55 }
 0x46d   : > { %1404 = vadd.xlane.f32.xlu1 %v1403_v41 }
 0x46e   : > { %v1346_v7 = vmul.f32 1.442695, %v1306_v57 }
 0x46f   : > { %1401 = vadd.xlane.f32.xlu0 %v1400_v43 }
 0x471   : > { %1410 = vadd.xlane.f32.xlu1 %v1409_v28 }
 0x473   : > { %1407 = vadd.xlane.f32.xlu0 %v1406_v21 }
 0x475   : > { %1416 = vadd.xlane.f32.xlu1 %v1415_v48 }
 0x477   : > { %1413 = vadd.xlane.f32.xlu0 %v1412_v49 }
 0x478   : > { %v1255_v61 = vpop.xlane.xlu1 %1254 }
 0x479   : > { %v4066_v63 = vpop.eup %3232  ;;  %v1315_v36 = vsub.f32 %v3922_v29, %v1255_v61 }
 0x47a   : > { %v1252_v26 = vpop.xlane.xlu0 %1251  ;;  %v1421_v22 = vsel %vm1201_vm2, %v4066_v63, 0.0 }
 0x47b   : > { %v1364_v27 = vmul.f32 1.442695, %v1315_v36  ;;  %v1314_v31 = vsub.f32 %v3928_v52, %v1252_v26  ;;  %1422 = vadd.xlane.f32.xlu1 %v1421_v22 }
 0x47c   : > { %v1237_v34 = vpop.xlane.xlu1 %1236 }
 0x47d   : > { %3234 = vpow2.f32 %v1364_v27  ;;  %v1362_v45 = vmul.f32 1.442695, %v1314_v31  ;;  %v1309_v24 = vsub.f32 %v3918_v47, %v1237_v34 }
 0x47e   : > { %3236 = vpow2.f32 %v1346_v7  ;;  %v1234_v37 = vpop.xlane.xlu0 %1233 }
 0x47f   : > { %3238 = vpow2.f32 %v1362_v45  ;;  %v1352_v41 = vmul.f32 1.442695, %v1309_v24  ;;  %v1308_v29 = vsub.f32 %v3920_v50, %v1234_v37 }
 0x480   : > { %v1261_v43 = vpop.xlane.xlu1 %1260 }
 0x481   : > { %3240 = vpow2.f32 %v1352_v41  ;;  %v1317_v28 = vsub.f32 %v3932_v54, %v1261_v43  ;;  %v1350_v21 = vmul.f32 1.442695, %v1308_v29 }
 0x482   : > { %v1258_v55 = vpop.xlane.xlu0 %1257 }
 0x483   : > { %v1368_v48 = vmul.f32 1.442695, %v1317_v28  ;;  %v1316_v52 = vsub.f32 %v3940_v56, %v1258_v55 }
 0x484   : > { %v1243_v57 = vpop.xlane.xlu1 %1242 }
 0x485   : > { %3242 = vpow2.f32 %v1368_v48  ;;  %v1366_v49 = vmul.f32 1.442695, %v1316_v52  ;;  %v1311_v47 = vsub.f32 %v3926_v38, %v1243_v57 }
 0x486   : > { %3244 = vpow2.f32 %v1350_v21  ;;  %v1240_v61 = vpop.xlane.xlu0 %1239 }
 0x487   : > { %3246 = vpow2.f32 %v1366_v49  ;;  %v1356_v36 = vmul.f32 1.442695, %v1311_v47  ;;  %v1310_v50 = vsub.f32 %v3936_v39, %v1240_v61 }
 0x488   : > { %v1267_v7 = vpop.xlane.xlu1 %1266 }
 0x489   : > { %3248 = vpow2.f32 %v1356_v36  ;;  %v1319_v54 = vsub.f32 %v3950_v60, %v1267_v7  ;;  %v1354_v22 = vmul.f32 1.442695, %v1310_v50 }
 0x48a   : > { %v4079_v26 = vpop.eup %3234  ;;  %v1264_v27 = vpop.xlane.xlu0 %1263 }
 0x48b   : > { %v4081_v56 = vpop.eup %3236  ;;  %v1372_v31 = vmul.f32 1.442695, %v1319_v54  ;;  %v1318_v34 = vsub.f32 %v3958_v0, %v1264_v27  ;;  %v1445_v38 = vsel %vm1201_vm2, %v4079_v26, 0.0 }
 0x48c   : > { %v4086_v45 = vpop.eup %3238  ;;  %1446 = vadd.xlane.f32.xlu0 %v1445_v38  ;;  %v1249_v39 = vpop.xlane.xlu1 %1248  ;;  %v1418_v43 = vsel %vm1201_vm2, %v4081_v56, 0.0 }
 0x48d   : > { %3250 = vpow2.f32 %v1372_v31  ;;  %v1370_v24 = vmul.f32 1.442695, %v1318_v34  ;;  %v1313_v60 = vsub.f32 %v3944_v58, %v1249_v39  ;;  %v1442_v37 = vsel %vm1201_vm2, %v4086_v45, 0.0 }
 0x48e   : > { %v4091_v41 = vpop.eup %3240  ;;  %3252 = vpow2.f32 %v1354_v22  ;;  %v1246_v29 = vpop.xlane.xlu0 %1245  ;;  %1443 = vadd.xlane.f32.xlu1 %v1442_v37 }
 0x48f   : > { %3254 = vpow2.f32 %v1370_v24  ;;  %v1360_v0 = vmul.f32 1.442695, %v1313_v60  ;;  %v1427_v58 = vsel %vm1201_vm2, %v4091_v41, 0.0  ;;  %v1312_v48 = vsub.f32 %v3954_v62, %v1246_v29 }
 0x490   : > { %1419 = vadd.xlane.f32.xlu0 %v1418_v43  ;;  %v1273_v28 = vpop.xlane.xlu1 %1272 }
 0x491   : > { %v1321_v21 = vsub.f32 %v3968_v5, %v1273_v28  ;;  %3256 = vpow2.f32 %v1360_v0  ;;  %v1358_v54 = vmul.f32 1.442695, %v1312_v48 }
 0x492   : > { %v4098_v55 = vpop.eup %3242  ;;  %v1270_v52 = vpop.xlane.xlu0 %1269  ;;  %1428 = vadd.xlane.f32.xlu1 %v1427_v58 }
 0x493   : > { %v4101_v57 = vpop.eup %3244  ;;  %v1376_v49 = vmul.f32 1.442695, %v1321_v21  ;;  %v1320_v47 = vsub.f32 %v3978_v12, %v1270_v52  ;;  %v1451_v61 = vsel %vm1201_vm2, %v4098_v55, 0.0 }
 0x494   : > { %v4106_v36 = vpop.eup %3246  ;;  %1452 = vadd.xlane.f32.xlu0 %v1451_v61  ;;  %v1279_v5 = vpop.xlane.xlu1 %1278  ;;  %v1424_v31 = vsel %vm1201_vm2, %v4101_v57, 0.0 }
 0x495   : > { %v1374_v50 = vmul.f32 1.442695, %v1320_v47  ;;  %v1448_v7 = vsel %vm1201_vm2, %v4106_v36, 0.0  ;;  %3258 = vpow2.f32 %v1376_v49  ;;  %v1323_v22 = vsub.f32 %v3960_v1, %v1279_v5 }
 0x496   : > { %v4110_v62 = vpop.eup %3248  ;;  %v1276_v27 = vpop.xlane.xlu0 %1275  ;;  %1449 = vadd.xlane.f32.xlu1 %v1448_v7 }
 0x497   : > { %3260 = vpow2.f32 %v1374_v50  ;;  %v1322_v12 = vsub.f32 %v3970_v6, %v1276_v27  ;;  %v1433_v39 = vsel %vm1201_vm2, %v4110_v62, 0.0  ;;  %v1380_v60 = vmul.f32 1.442695, %v1323_v22 }
 0x498   : > { %1425 = vadd.xlane.f32.xlu0 %v1424_v31  ;;  %v1285_v34 = vpop.xlane.xlu1 %1284  ;;  %3262 = vpow2.f32 %v1358_v54 }
 0x499   : > { %v1378_v38 = vmul.f32 1.442695, %v1322_v12  ;;  %v1325_v1 = vsub.f32 %v3980_v14, %v1285_v34 }
 0x49a   : > { %v4118_v24 = vpop.eup %3250  ;;  %v1282_v37 = vpop.xlane.xlu0 %1281  ;;  %1434 = vadd.xlane.f32.xlu1 %v1433_v39 }
 0x49b   : > { %v4121_v29 = vpop.eup %3252  ;;  %3264 = vpow2.f32 %v1378_v38  ;;  %v1324_v6 = vsub.f32 %v3986_v19, %v1282_v37  ;;  %v1457_v0 = vsel %vm1201_vm2, %v4118_v24, 0.0  ;;  %v1384_v14 = vmul.f32 1.442695, %v1325_v1 }
 0x49c   : > { %v4126_v43 = vpop.eup %3254  ;;  %1458 = vadd.xlane.f32.xlu0 %v1457_v0  ;;  %v1291_v28 = vpop.xlane.xlu1 %1290  ;;  %3266 = vpow2.f32 %v1380_v60  ;;  %v1430_v49 = vsel %vm1201_vm2, %v4121_v29, 0.0 }
 0x49d   : > { %v1382_v21 = vmul.f32 1.442695, %v1324_v6  ;;  %v1454_v58 = vsel %vm1201_vm2, %v4126_v43, 0.0  ;;  %v1327_v52 = vsub.f32 %v3994_v33, %v1291_v28 }
 0x49e   : > { %v1288_v48 = vpop.xlane.xlu0 %1287  ;;  %1455 = vadd.xlane.f32.xlu1 %v1454_v58  ;;  %v4134_v47 = vpop.eup %3256 }
 0x49f   : > { %3268 = vpow2.f32 %v1382_v21  ;;  %v1326_v19 = vsub.f32 %v4002_v44, %v1288_v48  ;;  %v1388_v50 = vmul.f32 1.442695, %v1327_v52  ;;  %v1439_v7 = vsel %vm1201_vm2, %v4134_v47, 0.0 }
 0x4a0   : > { %1431 = vadd.xlane.f32.xlu0 %v1430_v49  ;;  %3270 = vpow2.f32 %v1384_v14 }
 0x4a1   : > { %v1386_v61 = vmul.f32 1.442695, %v1326_v19 }
 0x4a2   : > { %v4136_v5 = vpop.eup %3258 }
 0x4a3   : > { %3272 = vpow2.f32 %v1386_v61  ;;  %v1463_v22 = vsel %vm1201_vm2, %v4136_v5, 0.0 }
 0x4a4   : > { %v4140_v54 = vpop.eup %3260  ;;  %1440 = vadd.xlane.f32.xlu0 %v1439_v7  ;;  %3274 = vpow2.f32 %v1388_v50 }
 0x4a5   : > { %v1460_v33 = vsel %vm1201_vm2, %v4140_v54, 0.0  ;;  %v4144_v44 = vpop.eup %3262 }
 0x4a6   : > { %1461 = vadd.xlane.f32.xlu1 %v1460_v33  ;;  %v1436_v34 = vsel %vm1201_vm2, %v4144_v44, 0.0 }
 0x4a8   : > { %v4148_v27 = vpop.eup %3264  ;;  %1464 = vadd.xlane.f32.xlu0 %v1463_v22 }
 0x4a9   : > { %v1466_v12 = vsel %vm1201_vm2, %v4148_v27, 0.0  ;;  %v4152_v31 = vpop.eup %3266 }
 0x4aa   : > { %1467 = vadd.xlane.f32.xlu1 %v1466_v12  ;;  %v1469_v1 = vsel %vm1201_vm2, %v4152_v31, 0.0 }
 0x4ac   : > { %v4156_v38 = vpop.eup %3268  ;;  %1437 = vadd.xlane.f32.xlu0 %v1436_v34 }
 0x4ad   : > { %v1472_v39 = vsel %vm1201_vm2, %v4156_v38, 0.0  ;;  %v4160_v60 = vpop.eup %3270 }
 0x4ae   : > { %1473 = vadd.xlane.f32.xlu1 %v1472_v39  ;;  %v1475_v0 = vsel %vm1201_vm2, %v4160_v60, 0.0 }
 0x4b0   : > { %v4164_v37 = vpop.eup %3272  ;;  %1470 = vadd.xlane.f32.xlu0 %v1469_v1 }
 0x4b1   : > { %v1478_v6 = vsel %vm1201_vm2, %v4164_v37, 0.0  ;;  %v4170_v28 = vpop.eup %3274 }
 0x4b2   : > { %1479 = vadd.xlane.f32.xlu1 %v1478_v6  ;;  %v1481_v21 = vsel %vm1201_vm2, %v4170_v28, 0.0 }
 0x4b4   : > { %1476 = vadd.xlane.f32.xlu0 %v1475_v0 }
 0x4b8   : > { %1482 = vadd.xlane.f32.xlu0 %v1481_v21 }
 0x4bd   : > { %v1399_v58 = vpop.xlane.xlu1 %1398 }
 0x4be   : > { %3276 = vrcp.f32 %v1399_v58 }
 0x4bf   : > { %v1396_v14 = vpop.xlane.xlu0 %1395 }
 0x4c0   : > { %3278 = vrcp.f32 %v1396_v14 }
 0x4c1   : > { %v1297_v48 = vpop.xlane.xlu1 %1296 }
 0x4c2   : > { %v1329_v52 = vsub.f32 %v4016_v4, %v1297_v48 }
 0x4c3   : > { %v1294_v19 = vpop.xlane.xlu0 %1293 }
 0x4c4   : > { %v1392_v49 = vmul.f32 1.442695, %v1329_v52  ;;  %v1328_v61 = vsub.f32 %v4024_v16, %v1294_v19 }
 0x4c6   : > { %3280 = vpow2.f32 %v1392_v49  ;;  %v1390_v50 = vmul.f32 1.442695, %v1328_v61 }
 0x4c8   : > { %3282 = vpow2.f32 %v1390_v50 }
 0x4cb   : > { %v3277_v7 = vpop.eup %3276 }
 0x4cc   : > { %v1493_v12 = vmul.f32 %v3277_v7, %v4014_v3 }
 0x4cd   : > { %v3279_v33 = vpop.eup %3278 }
 0x4ce   : > { %v1491_v22 = vmul.f32 %v3279_v33, %v4020_v10 }
 0x4d0   : > { %3060 = vmatprep.mubr.msk.f32.mxu1 %vm1201_vm2, %v1491_v22 }
 0x4d1   : > { %3061 = vmatmul.mubr.msk.f32.vlgmr.msra.gmra.mxu1 %vm1201_vm2, %v1493_v12 }
 0x4d2   : > { %3101 = vmatpush3.msra.mxu1 %v3874_v18  ;;  %v1863_v18 = vpop.permute.xlu0 %1862 }
 0x4d3   : > { %v4181_v4 = vpop.eup %3280  ;;  %3102 = vmatprep.subr.mxu1 %v4008_v51 }
 0x4d4   : > { %3103 = vmatpush3.msra.mxu1 %v4008_v51  ;;  %v1487_v16 = vsel %vm1201_vm2, %v4181_v4, 0.0 }
 0x4d5   : > { %v4187_v34 = vpop.eup %3282  ;;  %3104 = vmatprep.subr.mxu1 %v3946_v59  ;;  %1488 = vadd.xlane.f32.xlu0 %v1487_v16 }
 0x4d6   : > { %3105 = vmatpush3.msra.mxu1 %v3946_v59  ;;  %v1484_v3 = vsel %vm1201_vm2, %v4187_v34, 0.0  ;;  %v4203_v59 = vpop.permute.xlu1 %2015 }
 0x4d7   : > { %3106 = vmatprep.subr.mxu1 %v3868_v11  ;;  %1485 = vadd.xlane.f32.xlu1 %v1484_v3 }
 0x4d8   : > { %3107 = vmatpush3.msra.mxu1 %v3868_v11 }
 0x4d9   : > { %3108 = vmatprep.subr.mxu1 %v3870_v13 }
 0x4da   : > { %3109 = vmatpush3.msra.mxu1 %v3870_v13 }
 0x4db   : > { %3110 = vmatprep.subr.mxu1 %v3872_v15 }
 0x4dc   : > { %3111 = vmatpush3.msra.mxu1 %v3872_v15 }
 0x4dd   : > { %3112 = vmatprep.subr.mxu1 %v1863_v18 }
 0x4de   : > { %3113 = vmatpush3.msra.mxu1 %v1863_v18 }
 0x4e8   : > { %2013 = vrot.lane.b32.xlu1 %v3696_v40, %s3380_s24 }
 0x4eb   : > { %1860 = vrot.lane.b32.xlu0 %v3668_v32, %s3380_s24 }
 0x4f6   : > { %v1405_v11 = vpop.xlane.xlu1 %1404 }
 0x4f7   : > { %3284 = vrcp.f32 %v1405_v11 }
 0x4f8   : > { %v1402_v51 = vpop.xlane.xlu0 %1401 }
 0x4f9   : > { %3286 = vrcp.f32 %v1402_v51 }
 0x4fa   : > { %v1411_v13 = vpop.xlane.xlu1 %1410 }
 0x4fb   : > { %3288 = vrcp.f32 %v1411_v13 }
 0x4fc   : > { %v1408_v10 = vpop.xlane.xlu0 %1407 }
 0x4fd   : > { %3290 = vrcp.f32 %v1408_v10 }
 0x4fe   : > { %v1417_v39 = vpop.xlane.xlu1 %1416 }
 0x4ff   : > { %3292 = vrcp.f32 %v1417_v39 }
 0x500   : > { %v1414_v15 = vpop.xlane.xlu0 %1413 }
 0x501   : > { %3294 = vrcp.f32 %v1414_v15 }
 0x504   : > { %v3285_v1 = vpop.eup %3284  ;;  %v1423_v19 = vpop.xlane.xlu1 %1422 }
 0x505   : > { %v1497_v32 = vmul.f32 %v3285_v1, %v4041_v17 }
 0x506   : > { %v3287_v6 = vpop.eup %3286 }
 0x507   : > { %v1495_v40 = vmul.f32 %v3287_v6, %v4043_v25 }
 0x508   : > { %v3289_v0 = vpop.eup %3288 }
 0x509   : > { %3063 = vmatprep.mubr.msk.f32.mxu1 %vm1201_vm2, %v1495_v40  ;;  %v1501_v14 = vmul.f32 %v3289_v0, %v4047_v30 }
 0x50a   : > { %v3291_v21 = vpop.eup %3290  ;;  %3064 = vmatmul.mubr.msk.f32.gmra.mxu1 %vm1201_vm2, %v1497_v32 }
 0x50b   : > { %v1499_v58 = vmul.f32 %v3291_v21, %v4051_v35 }
 0x50c   : > { %v3293_v48 = vpop.eup %3292 }
 0x50d   : > { %3066 = vmatprep.mubr.msk.f32.mxu1 %vm1201_vm2, %v1499_v58  ;;  %v1505_v17 = vmul.f32 %v3293_v48, %v4055_v42 }
 0x50e   : > { %v3295_v52 = vpop.eup %3294  ;;  %3067 = vmatmul.mubr.msk.f32.gmra.mxu1 %vm1201_vm2, %v1501_v14 }
 0x50f   : > { %v1503_v25 = vmul.f32 %v3295_v52, %v4059_v46 }
 0x511   : > { %3069 = vmatprep.mubr.msk.f32.mxu1 %vm1201_vm2, %v1503_v25 }
 0x512   : > { %3070 = vmatmul.mubr.msk.f32.gmra.mxu1 %vm1201_vm2, %v1505_v17 }
 0x515   : > { %v4217_v49 = vpop.xlane.xlu0 %1446 }
 0x517   : > { %v1444_v35 = vpop.xlane.xlu1 %1443 }
 0x518   : > { %3296 = vrcp.f32 %v1444_v35 }
 0x519   : > { %3298 = vrcp.f32 %v1423_v19  ;;  %v1420_v30 = vpop.xlane.xlu0 %1419 }
 0x51a   : > { %3300 = vrcp.f32 %v1420_v30 }
 0x51b   : > { %v1429_v61 = vpop.xlane.xlu1 %1428 }
 0x51c   : > { %3302 = vrcp.f32 %v1429_v61 }
 0x51d   : > { %v4219_v50 = vpop.xlane.xlu0 %1452 }
 0x51f   : > { %v4221_v7 = vpop.xlane.xlu1 %1449 }
 0x521   : > { %v1426_v46 = vpop.xlane.xlu0 %1425 }
 0x522   : > { %3304 = vrcp.f32 %v1426_v46 }
 0x523   : > { %v1435_v33 = vpop.xlane.xlu1 %1434 }
 0x524   : > { %3306 = vrcp.f32 %v1435_v33 }
 0x525   : > { %v3297_v42 = vpop.eup %3296  ;;  %v4223_v22 = vpop.xlane.xlu0 %1458 }
 0x526   : > { %v3299_v12 = vpop.eup %3298  ;;  %v1523_v16 = vmul.f32 %v3297_v42, %v4086_v45 }
 0x527   : > { %v3301_v3 = vpop.eup %3300  ;;  %v1509_v11 = vmul.f32 %v3299_v12, %v4066_v63  ;;  %v1456_v13 = vpop.xlane.xlu1 %1455 }
 0x528   : > { %3116 = vmatprep.mubr.msk.f32.mxu1 %vm1201_vm2, %v1523_v16  ;;  %v1507_v18 = vmul.f32 %v3301_v3, %v4081_v56 }
 0x529   : > { %v1432_v51 = vpop.xlane.xlu0 %1431  ;;  %v3303_v10 = vpop.eup %3302 }
 0x52a   : > { %3308 = vrcp.f32 %v1432_v51  ;;  %3088 = vmatprep.mubr.msk.f32.mxu0 %vm1201_vm2, %v1507_v18  ;;  %v1513_v1 = vmul.f32 %v3303_v10, %v4091_v41 }
 0x52b   : > { %3089 = vmatmul.mubr.msk.f32.vlgmr.msra.gmra.mxu0 %vm1201_vm2, %v1509_v11 }
 0x52c   : > { %3129 = vmatpush3.msra.mxu0 %v3864_v9 }
 0x52d   : > { %3130 = vmatprep.subr.mxu0 %v4010_v53  ;;  %v1441_v45 = vpop.xlane.xlu0 %1440 }
 0x52e   : > { %3131 = vmatpush3.msra.mxu0 %v4010_v53  ;;  %3310 = vrcp.f32 %v1441_v45 }
 0x52f   : > { %v3305_v39 = vpop.eup %3304  ;;  %3132 = vmatprep.subr.mxu0 %v3962_v2  ;;  %v1462_v63 = vpop.xlane.xlu1 %1461 }
 0x530   : > { %3133 = vmatpush3.msra.mxu0 %v3962_v2  ;;  %v1511_v56 = vmul.f32 %v3305_v39, %v4101_v57 }
 0x531   : > { %3134 = vmatprep.subr.mxu0 %v3974_v8  ;;  %v1465_v15 = vpop.xlane.xlu0 %1464  ;;  %v3307_v53 = vpop.eup %3306 }
 0x532   : > { %3135 = vmatpush3.msra.mxu0 %v3974_v8  ;;  %3091 = vmatprep.mubr.msk.f32.mxu0 %vm1201_vm2, %v1511_v56  ;;  %v1517_v57 = vmul.f32 %v3307_v53, %v4110_v62 }
 0x533   : > { %3136 = vmatprep.subr.mxu0 %v3988_v23  ;;  %3092 = vmatmul.mubr.msk.f32.gmra.mxu0 %vm1201_vm2, %v1513_v1  ;;  %v1468_v9 = vpop.xlane.xlu1 %1467 }
 0x534   : > { %3137 = vmatpush3.msra.mxu0 %v3988_v23  ;;  %3312 = vrcp.f32 %v1468_v9 }
 0x535   : > { %3138 = vmatprep.subr.mxu0 %v3998_v20  ;;  %v1438_v2 = vpop.xlane.xlu0 %1437 }
 0x536   : > { %3314 = vrcp.f32 %v1438_v2  ;;  %3139 = vmatpush3.msra.mxu0 %v3998_v20 }
 0x537   : > { %v3309_v41 = vpop.eup %3308  ;;  %3140 = vmatprep.subr.mxu0 %v4203_v59  ;;  %3316 = vrcp.f32 %v4217_v49 }
 0x538   : > { %3141 = vmatpush3.msra.mxu0 %v4203_v59  ;;  %v1515_v8 = vmul.f32 %v3309_v41, %v4121_v29  ;;  %v1474_v29 = vpop.xlane.xlu1 %1473  ;;  %3318 = vrcp.f32 %v4221_v7 }
 0x539   : > { %v1471_v62 = vpop.xlane.xlu0 %1470 }
 0x53a   : > { %3094 = vmatprep.mubr.msk.f32.mxu0 %vm1201_vm2, %v1515_v8  ;;  %3320 = vrcp.f32 %v1471_v62  ;;  %v2288_v62 = vld [vmem:[%s4476_s3] sm:$0xff] }
 0x53b   : > { %3095 = vmatmul.mubr.msk.f32.gmra.mxu0 %vm1201_vm2, %v1517_v57  ;;  %v3311_v23 = vpop.eup %3310  ;;  %3322 = vrcp.f32 %v1474_v29 }
 0x53c   : > { %v1521_v20 = vmul.f32 %v3311_v23, %v4134_v47  ;;  %3324 = vrcp.f32 %v4219_v50  ;;  %v1480_v47 = vpop.xlane.xlu1 %1479 }
 0x53d   : > { %v1477_v59 = vpop.xlane.xlu0 %1476  ;;  %3326 = vrcp.f32 %v1456_v13 }
 0x53e   : > { %3328 = vrcp.f32 %v1477_v59 }
 0x53f   : > { %3330 = vrcp.f32 %v1480_v47 }
 0x540   : > { %3332 = vrcp.f32 %v4223_v22 }
 0x541   : > { %v3313_v6 = vpop.eup %3312  ;;  %3334 = vrcp.f32 %v1462_v63 }
 0x542   : > { %v1539_v0 = vmul.f32 %v3313_v6, %v4148_v27  ;;  %v2291_v6 = vld [vmem:[%s4476_s3 + $0x18] sm:$0xff] }
 0x543   : > { %v3315_v40 = vpop.eup %3314 }
 0x544   : > { %v1519_v32 = vmul.f32 %v3315_v40, %v4144_v44  ;;  %v1483_v44 = vpop.xlane.xlu0 %1482  ;;  %v3317_v21 = vpop.eup %3316  ;;  %v2290_v40 = vld [vmem:[%s4476_s3 + $0x10] sm:$0xff] }
 0x545   : > { %3336 = vrcp.f32 %v1483_v44  ;;  %v3319_v14 = vpop.eup %3318  ;;  %v1525_v17 = vmul.f32 %v3317_v21, %v4079_v26 }
 0x546   : > { %3097 = vmatprep.mubr.msk.f32.mxu0 %vm1201_vm2, %v1519_v32  ;;  %3338 = vrcp.f32 %v1465_v15  ;;  %v1527_v35 = vmul.f32 %v3319_v14, %v4106_v36 }
 0x547   : > { %3098 = vmatmul.mubr.msk.f32.gmra.mxu0 %vm1201_vm2, %v1521_v20  ;;  %v3321_v48 = vpop.eup %3320 }
 0x548   : > { %3144 = vmatprep.mubr.msk.f32.mxu0 %vm1201_vm2, %v1539_v0  ;;  %v3323_v25 = vpop.eup %3322  ;;  %v1541_v61 = vmul.f32 %v3321_v48, %v4152_v31  ;;  %v2289_v0 = vld [vmem:[%s4476_s3 + $0x8] sm:$0xff] }
 0x549   : > { %v3325_v19 = vpop.eup %3324  ;;  %v1543_v7 = vmul.f32 %v3323_v25, %v4156_v38 }
 0x54a   : > { %v3327_v30 = vpop.eup %3326  ;;  %v1529_v26 = vmul.f32 %v3325_v19, %v4098_v55 }
 0x54b   : > { %v3329_v50 = vpop.eup %3328  ;;  %v1531_v36 = vmul.f32 %v3327_v30, %v4126_v43 }
 0x54c   : > { %v3331_v46 = vpop.eup %3330  ;;  %v1545_v33 = vmul.f32 %v3329_v50, %v4160_v60 }
 0x54d   : > { %v3333_v42 = vpop.eup %3332  ;;  %v1547_v38 = vmul.f32 %v3331_v46, %v4164_v37 }
 0x54e   : > { %v3335_v31 = vpop.eup %3334  ;;  %v1533_v12 = vmul.f32 %v3333_v42, %v4118_v24 }
 0x54f   : > { %v1535_v16 = vmul.f32 %v3335_v31, %v4140_v54 }
 0x552   : > { %v3337_v22 = vpop.eup %3336 }
 0x553   : > { %v3339_v55 = vpop.eup %3338  ;;  %v1549_v3 = vmul.f32 %v3337_v22, %v4170_v28 }
 0x554   : > { %v1537_v37 = vmul.f32 %v3339_v55, %v4136_v5 }
 0x55e   : > { %v1489_v27 = vpop.xlane.xlu0 %1488 }
 0x55f   : > { %3340 = vrcp.f32 %v1489_v27 }
 0x560   : > { %v1486_v58 = vpop.xlane.xlu1 %1485 }
 0x561   : > { %3342 = vrcp.f32 %v1486_v58 }
 0x562   : > { %v1861_v52 = vpop.permute.xlu0 %1860 }
 0x563   : > { %3114 = vmatprep.subr.mxu1 %v1861_v52 }
 0x564   : > { %3115 = vmatpush3.msra.mxu1 %v1861_v52  ;;  %v2014_v49 = vpop.permute.xlu1 %2013 }
 0x565   : > { %3117 = vmatmul.mubr.msk.f32.vlgmr.msra.gmra.mxu1 %vm1201_vm2, %v1525_v17  ;;  %3142 = vmatprep.subr.mxu0 %v2014_v49 }
 0x566   : > { %3119 = vmatprep.mubr.msk.f32.mxu1 %vm1201_vm2, %v1527_v35  ;;  %3143 = vmatpush3.msra.mxu0 %v2014_v49 }
 0x567   : > { %3145 = vmatmul.mubr.msk.f32.vlgmr.msra.gmra.mxu0 %vm1201_vm2, %v1541_v61  ;;  %3156 = vmatprep.subr.mxu0 %v2291_v6 }
 0x568   : > { %3147 = vmatprep.mubr.msk.f32.mxu0 %vm1201_vm2, %v1543_v7  ;;  %3176 = vmatprep.subr.mxu1 %v2291_v6 }
 0x569   : > { %3120 = vmatmul.mubr.msk.f32.gmra.mxu1 %vm1201_vm2, %v1529_v26  ;;  %3157 = vmatpush3.msra.mxu0 %v2291_v6 }
 0x56a   : > { %3122 = vmatprep.mubr.msk.f32.mxu1 %vm1201_vm2, %v1531_v36  ;;  %3180 = vmatpush3.msra.mxu1 %v2291_v6 }
 0x56b   : > { %3148 = vmatmul.mubr.msk.f32.gmra.mxu0 %vm1201_vm2, %v1545_v33  ;;  %3177 = vmatprep.subr.mxu1 %v2290_v40 }
 0x56c   : > { %3150 = vmatprep.mubr.msk.f32.mxu0 %vm1201_vm2, %v1547_v38  ;;  %v3341_v43 = vpop.eup %3340  ;;  %3158 = vmatprep.subr.mxu0 %v2290_v40 }
 0x56d   : > { %3123 = vmatmul.mubr.msk.f32.gmra.mxu1 %vm1201_vm2, %v1533_v12  ;;  %v1553_v24 = vmul.f32 %v3341_v43, %v4181_v4  ;;  %3159 = vmatpush3.msra.mxu0 %v2290_v40 }
 0x56e   : > { %v3343_v60 = vpop.eup %3342  ;;  %3125 = vmatprep.mubr.msk.f32.mxu1 %vm1201_vm2, %v1535_v16  ;;  %3181 = vmatpush3.msra.mxu1 %v2290_v40 }
 0x56f   : > { %3151 = vmatmul.mubr.msk.f32.gmra.mxu0 %vm1201_vm2, %v1549_v3  ;;  %v1551_v18 = vmul.f32 %v3343_v60, %v4187_v34  ;;  %3178 = vmatprep.subr.mxu1 %v2289_v0 }
 0x570   : > { %3160 = vmatprep.subr.mxu0 %v2289_v0  ;;  %3182 = vmatpush3.msra.mxu1 %v2289_v0 }
 0x571   : > { %3126 = vmatmul.mubr.msk.f32.gmra.mxu1 %vm1201_vm2, %v1537_v37  ;;  %3153 = vmatprep.mubr.msk.f32.mxu0 %vm1201_vm2, %v1551_v18 }
 0x572   : > { %3161 = vmatpush3.msra.mxu0 %v2289_v0  ;;  %3179 = vmatprep.subr.mxu1 %v2288_v62 }
 0x573   : > { %3154 = vmatmul.mubr.msk.f32.gmra.mxu0 %vm1201_vm2, %v1553_v24  ;;  %3162 = vmatprep.subr.mxu0 %v2288_v62 }
 0x574   : > { %3183 = vmatpush3.msra.mxu1 %v2288_v62  ;;  %3163 = vmatpush3.msra.mxu0 %v2288_v62 }
 0x591   : > { %v4292_v51 = vpop.f32.mrf.mxu1 }
 0x593   : > { %v4294_v5 = vpop.f32.mrf.mxu1 }
 0x5ca   : > { %v4296_v34 = vpop.f32.mrf.mxu1 }
 0x5cc   : > { %v4298_v13 = vpop.f32.mrf.mxu1 }
 0x5ce   : > { %v4300_v45 = vpop.f32.mrf.mxu1 }
 0x5d0   : > { %v4302_v4 = vpop.f32.mrf.mxu1 }
 0x5d2   : > { %v4304_v10 = vpop.f32.mrf.mxu1 }
 0x5d4   : > { %v4306_v39 = vpop.f32.mrf.mxu1 }
 0x5eb   : > { %v3090_v54 = vpop.f32.mrf.mxu0 }
 0x5ec   : > { %2176 = vrot.lane.b32.xlu0 %v3090_v54, %s3381_s25 }
 0x5ed   : > { %v1821_v28 = vpop.f32.mrf.mxu0 }
 0x5f3   : > { %v3093_v11 = vpop.f32.mrf.mxu0 }
 0x5f4   : > { %2180 = vrot.lane.b32.xlu1 %v3093_v11, %s3381_s25 }
 0x5f5   : > { %v1831_v63 = vpop.f32.mrf.mxu0 }
 0x5fb   : > { %v3096_v56 = vpop.f32.mrf.mxu0 }
 0x5fd   : > { %v1841_v9 = vpop.f32.mrf.mxu0 }
 0x607   : > { %v3099_v53 = vpop.f32.mrf.mxu0 }
 0x609   : > { %v1851_v8 = vpop.f32.mrf.mxu0 }
 0x625   : > { %v3118_v15 = vpop.f32.mrf.mxu1 }
 0x626   : > { %2208 = vrot.lane.b32.xlu0 %v3118_v15, %s3382_s27 }
 0x627   : > { %v1974_v1 = vpop.f32.mrf.mxu1  ;;  %v3146_v57 = vpop.f32.mrf.mxu0 }
 0x629   : > { %v3121_v2 = vpop.f32.mrf.mxu1  ;;  %v2127_v32 = vpop.f32.mrf.mxu0 }
 0x62a   : > { %2174 = vrot.lane.b32.xlu0 %v1821_v28, %s3381_s25  ;;  %2212 = vrot.lane.b32.xlu1 %v3121_v2, %s3382_s27 }
 0x62b   : > { %v1984_v41 = vpop.f32.mrf.mxu1  ;;  %v3149_v29 = vpop.f32.mrf.mxu0 }
 0x62d   : > { %v3124_v23 = vpop.f32.mrf.mxu1  ;;  %v2137_v47 = vpop.f32.mrf.mxu0 }
 0x62e   : > { %2206 = vrot.lane.b32.xlu0 %v1974_v1, %s3382_s27  ;;  %2184 = vrot.lane.b32.xlu1 %v3096_v56, %s3381_s25 }
 0x62f   : > { %v1994_v20 = vpop.f32.mrf.mxu1  ;;  %v3152_v44 = vpop.f32.mrf.mxu0 }
 0x631   : > { %v3127_v59 = vpop.f32.mrf.mxu1  ;;  %v2147_v21 = vpop.f32.mrf.mxu0 }
 0x632   : > { %2178 = vrot.lane.b32.xlu0 %v1831_v63, %s3381_s25  ;;  %2216 = vrot.lane.b32.xlu1 %v3124_v23, %s3382_s27 }
 0x633   : > { %v2004_v27 = vpop.f32.mrf.mxu1  ;;  %v3155_v58 = vpop.f32.mrf.mxu0 }
 0x635   : > { %v2157_v14 = vpop.f32.mrf.mxu0 }
 0x636   : > { %2210 = vrot.lane.b32.xlu0 %v1984_v41, %s3382_s27  ;;  %2188 = vrot.lane.b32.xlu1 %v3099_v53, %s3381_s25 }
 0x63a   : > { %2182 = vrot.lane.b32.xlu0 %v1841_v9, %s3381_s25  ;;  %2220 = vrot.lane.b32.xlu1 %v3127_v59, %s3382_s27 }
 0x63e   : > { %2214 = vrot.lane.b32.xlu0 %v1994_v20, %s3382_s27  ;;  %2186 = vrot.lane.b32.xlu1 %v1851_v8, %s3381_s25 }
 0x642   : > { %2218 = vrot.lane.b32.xlu1 %v2004_v27, %s3382_s27  ;;  %2242 = vrot.lane.b32.xlu0 %v2137_v47, %s3383_s12  ;;  %v3360_v47 = vld [vmem:[%s3435_s26 + $0x8] sm:$0xff] }
 0x646   : > { %2244 = vrot.lane.b32.xlu1 %v3149_v29, %s3383_s12  ;;  %2246 = vrot.lane.b32.xlu0 %v2147_v21, %s3383_s12 }
 0x64a   : > { %2248 = vrot.lane.b32.xlu1 %v3152_v44, %s3383_s12  ;;  %2238 = vrot.lane.b32.xlu0 %v2127_v32, %s3383_s12  ;;  %v2745_v32 = vld [vmem:[%s4477_s4] ss:$0 sm:$0xff] }
 0x64e   : > { %2240 = vrot.lane.b32.xlu0 %v3146_v57, %s3383_s12  ;;  %2250 = vrot.lane.b32.xlu1 %v2157_v14, %s3383_s12 }
 0x652   : > { %2252 = vrot.lane.b32.xlu1 %v3155_v58, %s3383_s12  ;;  %v3361_v58 = vld [vmem:[%s3435_s26 + $0x28] sm:$0xff] }
 0x65e   : > { %v2177_v48 = vpop.permute.xlu0 %2176 }
 0x666   : > { %v2181_v52 = vpop.permute.xlu1 %2180 }
 0x667   : > { %v2265_v55 = vsel %vm604_vm1, %v4296_v34, %v2181_v52 }
 0x698   : > { %v2209_v25 = vpop.permute.xlu0 %2208 }
 0x69c   : > { %v2175_v17 = vpop.permute.xlu0 %2174  ;;  %v2213_v19 = vpop.permute.xlu1 %2212 }
 0x69d   : > { %v2274_v43 = vsel %vm2270_vm4, %v2265_v55, %v2213_v19  ;;  %v2262_v54 = vsel %vm604_vm1, %v4294_v5, %v2175_v17  ;;  %v2263_v5 = vsel %vm604_vm1, %v4292_v51, %v2177_v48  ;;  %v3362_v48 = vld [vmem:[%s3435_s26] sm:$0xff]  ;;  %v3363_v19 = vld [vmem:[%s3435_s26 + $0x18] sm:$0xff] }
 0x69e   : > { %v2272_v15 = vsel %vm2270_vm4, %v2263_v5, %v2209_v25 }
 0x6a0   : > { %v2207_v49 = vpop.permute.xlu0 %2206  ;;  %v2185_v35 = vpop.permute.xlu1 %2184 }
 0x6a1   : > { %v2267_v28 = vsel %vm604_vm1, %v4300_v45, %v2185_v35  ;;  %v2271_v11 = vsel %vm2270_vm4, %v2262_v54, %v2207_v49 }
 0x6a4   : > { %v2179_v30 = vpop.permute.xlu0 %2178  ;;  %v2217_v61 = vpop.permute.xlu1 %2216 }
 0x6a5   : > { %v2264_v31 = vsel %vm604_vm1, %v4298_v13, %v2179_v30  ;;  %v2276_v34 = vsel %vm2270_vm4, %v2267_v28, %v2217_v61  ;;  %v3364_v61 = vld [vmem:[%s3435_s26 + $0x38] sm:$0xff] }
 0x6a8   : > { %v2211_v50 = vpop.permute.xlu0 %2210  ;;  %v2189_v7 = vpop.permute.xlu1 %2188 }
 0x6a9   : > { %v2273_v33 = vsel %vm2270_vm4, %v2264_v31, %v2211_v50  ;;  %v2269_v51 = vsel %vm604_vm1, %v4304_v10, %v2189_v7 }
 0x6ac   : > { %v2183_v46 = vpop.permute.xlu0 %2182  ;;  %v2221_v26 = vpop.permute.xlu1 %2220 }
 0x6ad   : > { %v2266_v16 = vsel %vm604_vm1, %v4302_v4, %v2183_v46  ;;  %v3365_v46 = vld [vmem:[%s3435_s26 + $0x10] sm:$0xff] }
 0x6b0   : > { %v2215_v42 = vpop.permute.xlu0 %2214  ;;  %v2187_v36 = vpop.permute.xlu1 %2186 }
 0x6b1   : > { %v2275_v3 = vsel %vm2270_vm4, %v2266_v16, %v2215_v42  ;;  %v2268_v45 = vsel %vm604_vm1, %v4306_v39, %v2187_v36  ;;  %v2278_v39 = vsel %vm2270_vm4, %v2269_v51, %v2221_v26  ;;  %v3367_v16 = vld [vmem:[%s3435_s26 + $0x30] sm:$0xff] }
 0x6b4   : > { %v2243_v22 = vpop.permute.xlu0 %2242  ;;  %v2219_v38 = vpop.permute.xlu1 %2218 }
 0x6b5   : > { %v2282_v12 = vsel %vm2279_vm3, %v2273_v33, %v2243_v22  ;;  %v2277_v1 = vsel %vm2270_vm4, %v2268_v45, %v2219_v38  ;;  %v3366_v22 = vld [vmem:[%s3435_s26 + $0x20] sm:$0xff] }
 0x6b6   : > { %3167 = vmatprep.mubr.msk.f32.mxu1 %vm260_vm0, %v2282_v12 }
 0x6b8   : > { %v2247_v60 = vpop.permute.xlu0 %2246  ;;  %v2245_v37 = vpop.permute.xlu1 %2244 }
 0x6b9   : > { %v2284_v18 = vsel %vm2279_vm3, %v2275_v3, %v2247_v60  ;;  %v2283_v24 = vsel %vm2279_vm3, %v2274_v43, %v2245_v37 }
 0x6ba   : > { %3168 = vmatmul.mubr.msk.f32.vlgmr.msra.gmra.mxu1 %vm260_vm0, %v2283_v24 }
 0x6bb   : > { %3170 = vmatprep.mubr.msk.f32.mxu1 %vm260_vm0, %v2284_v18 }
 0x6bc   : > { %v2239_v13 = vpop.permute.xlu0 %2238  ;;  %v2249_v4 = vpop.permute.xlu1 %2248 }
 0x6bd   : > { %v2280_v63 = vsel %vm2279_vm3, %v2271_v11, %v2239_v13  ;;  %v2285_v56 = vsel %vm2279_vm3, %v2276_v34, %v2249_v4 }
 0x6be   : > { %3164 = vmatprep.mubr.msk.f32.mxu0 %vm260_vm0, %v2280_v63  ;;  %3171 = vmatmul.mubr.msk.f32.gmra.mxu1 %vm260_vm0, %v2285_v56 }
 0x6c0   : > { %v2241_v9 = vpop.permute.xlu0 %2240  ;;  %v2251_v2 = vpop.permute.xlu1 %2250 }
 0x6c1   : > { %v2281_v53 = vsel %vm2279_vm3, %v2272_v15, %v2241_v9  ;;  %v2286_v41 = vsel %vm2279_vm3, %v2277_v1, %v2251_v2 }
 0x6c2   : > { %3165 = vmatmul.mubr.msk.f32.vlgmr.msra.gmra.mxu0 %vm260_vm0, %v2281_v53  ;;  %3173 = vmatprep.mubr.msk.f32.mxu1 %vm260_vm0, %v2286_v41 }
 0x6c4   : > { %v2253_v8 = vpop.permute.xlu1 %2252 }
 0x6c5   : > { %v2287_v57 = vsel %vm2279_vm3, %v2278_v39, %v2253_v8 }
 0x6c6   : > { %3174 = vmatmul.mubr.msk.f32.gmra.mxu1 %vm260_vm0, %v2287_v57 }
 0x77a   : > { %v3169_v23 = vpop.f32.mrf.mxu1 }
 0x77b   : > { %v2405_v59 = vadd.f32 %v3169_v23, %v2745_v32 }
 0x77c   : > { %v2399_v6 = vpop.f32.mrf.mxu1 }
 0x77d   : > { %v2431_v49 = vadd.f32 %v3363_v19, %v2405_v59  ;;  %v2400_v35 = vadd.f32 %v2745_v32, %v2399_v6 }
 0x77e   : > { %v3172_v40 = vpop.f32.mrf.mxu1 }
 0x77f   : > { %v2415_v0 = vadd.f32 %v3172_v40, %v2745_v32  ;;  %v2430_v26 = vadd.f32 %v3365_v46, %v2400_v35  ;;  %v2445_v36 = vsel %vm260_vm0, %v2431_v49, 0.0 }
 0x780   : > { %v2409_v62 = vpop.f32.mrf.mxu1 }
 0x781   : > { %v2433_v14 = vadd.f32 %v3361_v58, %v2415_v0  ;;  %v2410_v42 = vadd.f32 %v2745_v32, %v2409_v62  ;;  %v2442_v55 = vsel %vm260_vm0, %v2430_v26, 0.0 }
 0x782   : > { %v3166_v20 = vpop.f32.mrf.mxu0 }
 0x783   : > { %v2395_v10 = vadd.f32 %v3166_v20, %v2745_v32  ;;  %v2451_v7 = vsel %vm260_vm0, %v2433_v14, 0.0  ;;  %v2432_v38 = vadd.f32 %v3366_v22, %v2410_v42 }
 0x784   : > { %v2389_v29 = vpop.f32.mrf.mxu0 }
 0x785   : > { %v2429_v44 = vadd.f32 %v3360_v47, %v2395_v10  ;;  %v2390_v27 = vadd.f32 %v2745_v32, %v2389_v29  ;;  %v2448_v3 = vsel %vm260_vm0, %v2432_v38, 0.0 }
 0x786   : > { %v3175_v21 = vpop.f32.mrf.mxu1 }
 0x787   : > { %v2428_v52 = vadd.f32 %v3362_v48, %v2390_v27  ;;  %v2425_v25 = vadd.f32 %v3175_v21, %v2745_v32  ;;  %v2439_v17 = vsel %vm260_vm0, %v2429_v44, 0.0 }
 0x788   : > { %2440 = vadd.xlane.f32.xlu1 %v2439_v17  ;;  %v2419_v31 = vpop.f32.mrf.mxu1 }
 0x789   : > { %v2436_v30 = vsel %vm260_vm0, %v2428_v52, 0.0  ;;  %v2435_v50 = vadd.f32 %v3364_v61, %v2425_v25  ;;  %v2420_v12 = vadd.f32 %v2745_v32, %v2419_v31 }
 0x78a   : > { %2437 = vadd.xlane.f32.xlu0 %v2436_v30 }
 0x78b   : > { %v2457_v33 = vsel %vm260_vm0, %v2435_v50, 0.0  ;;  %v2434_v43 = vadd.f32 %v3367_v16, %v2420_v12 }
 0x78c   : > { %2452 = vadd.xlane.f32.xlu1 %v2451_v7 }
 0x78d   : > { %v2454_v60 = vsel %vm260_vm0, %v2434_v43, 0.0 }
 0x78e   : > { %2446 = vadd.xlane.f32.xlu0 %v2445_v36 }
 0x790   : > { %2458 = vadd.xlane.f32.xlu1 %v2457_v33 }
 0x792   : > { %2443 = vadd.xlane.f32.xlu0 %v2442_v55 }
 0x796   : > { %2449 = vadd.xlane.f32.xlu0 %v2448_v3  ;;  %v2754_v3 = vld [vmem:[%s4478_s5 + $0x2] ss:$0 sm:$0xff] }
 0x79a   : > { %2455 = vadd.xlane.f32.xlu0 %v2454_v60 }
 0x811   : > { %v2441_v37 = vpop.xlane.xlu1 %2440 }
 0x812   : > { %v2461_v18 = vmul.f32 0.03125, %v2441_v37 }
 0x813   : > { %v2438_v24 = vpop.xlane.xlu0 %2437 }
 0x814   : > { %v4393_v54 = vsub.f32 %v2429_v44, %v2461_v18  ;;  %v2460_v28 = vmul.f32 0.03125, %v2438_v24 }
 0x815   : > { %v2453_v11 = vpop.xlane.xlu1 %2452 }
 0x816   : > { %v4395_v34 = vsub.f32 %v2428_v52, %v2460_v28  ;;  %v2465_v13 = vmul.f32 0.03125, %v2453_v11  ;;  %v2477_v4 = vmul.f32 %v4393_v54, %v4393_v54  ;;  %v2755_v28 = vld [vmem:[%s4478_s5 + $0x3] ss:$0 sm:$0xff] }
 0x817   : > { %v2447_v63 = vpop.xlane.xlu0 %2446 }
 0x818   : > { %v2463_v56 = vmul.f32 0.03125, %v2447_v63  ;;  %v2487_v5 = vsel %vm260_vm0, %v2477_v4, 0.0  ;;  %v2476_v45 = vmul.f32 %v4395_v34, %v4395_v34  ;;  %v4402_v1 = vsub.f32 %v2433_v14, %v2465_v13 }
 0x819   : > { %2488 = vadd.xlane.f32.xlu1 %v2487_v5  ;;  %v2459_v15 = vpop.xlane.xlu1 %2458 }
 0x81a   : > { %v4404_v9 = vsub.f32 %v2431_v49, %v2463_v56  ;;  %v2467_v2 = vmul.f32 0.03125, %v2459_v15  ;;  %v2484_v53 = vsel %vm260_vm0, %v2476_v45, 0.0  ;;  %v2481_v6 = vmul.f32 %v4402_v1, %v4402_v1 }
 0x81b   : > { %v2444_v41 = vpop.xlane.xlu0 %2443  ;;  %2485 = vadd.xlane.f32.xlu0 %v2484_v53 }
 0x81c   : > { %v2462_v51 = vmul.f32 0.03125, %v2444_v41  ;;  %v2479_v39 = vmul.f32 %v4404_v9, %v4404_v9  ;;  %v4409_v8 = vsub.f32 %v2435_v50, %v2467_v2  ;;  %v2499_v62 = vsel %vm260_vm0, %v2481_v6, 0.0 }
 0x81e   : > { %v4411_v57 = vsub.f32 %v2430_v26, %v2462_v51  ;;  %v2493_v23 = vsel %vm260_vm0, %v2479_v39, 0.0  ;;  %v2483_v29 = vmul.f32 %v4409_v8, %v4409_v8 }
 0x81f   : > { %v2450_v40 = vpop.xlane.xlu0 %2449  ;;  %2494 = vadd.xlane.f32.xlu1 %v2493_v23 }
 0x820   : > { %v2464_v32 = vmul.f32 0.03125, %v2450_v40  ;;  %v2478_v20 = vmul.f32 %v4411_v57, %v4411_v57  ;;  %v2505_v58 = vsel %vm260_vm0, %v2483_v29, 0.0 }
 0x822   : > { %v4418_v0 = vsub.f32 %v2432_v38, %v2464_v32  ;;  %v2490_v10 = vsel %vm260_vm0, %v2478_v20, 0.0 }
 0x823   : > { %2491 = vadd.xlane.f32.xlu0 %v2490_v10  ;;  %v2456_v59 = vpop.xlane.xlu0 %2455  ;;  %2500 = vadd.xlane.f32.xlu1 %v2499_v62 }
 0x824   : > { %v2466_v47 = vmul.f32 0.03125, %v2456_v59  ;;  %v2480_v44 = vmul.f32 %v4418_v0, %v4418_v0 }
 0x826   : > { %v4426_v27 = vsub.f32 %v2434_v43, %v2466_v47  ;;  %v2496_v21 = vsel %vm260_vm0, %v2480_v44, 0.0 }
 0x827   : > { %2497 = vadd.xlane.f32.xlu0 %v2496_v21  ;;  %2506 = vadd.xlane.f32.xlu1 %v2505_v58 }
 0x828   : > { %v2482_v14 = vmul.f32 %v4426_v27, %v4426_v27 }
 0x82a   : > { %v2502_v48 = vsel %vm260_vm0, %v2482_v14, 0.0 }
 0x82b   : > { %2503 = vadd.xlane.f32.xlu0 %v2502_v48 }
 0x8a2   : > { %v2489_v52 = vpop.xlane.xlu1 %2488 }
 0x8a3   : > { %v2509_v25 = vmul.f32 0.03125, %v2489_v52 }
 0x8a4   : > { %v2486_v17 = vpop.xlane.xlu0 %2485 }
 0x8a5   : > { %v2517_v19 = vadd.f32 1e-05, %v2509_v25  ;;  %v2508_v49 = vmul.f32 0.03125, %v2486_v17 }
 0x8a7   : > { %3344 = vrsqrt.f32 %v2517_v19  ;;  %v2516_v35 = vadd.f32 1e-05, %v2508_v49 }
 0x8a8   : > { %v2495_v30 = vpop.xlane.xlu1 %2494 }
 0x8a9   : > { %3346 = vrsqrt.f32 %v2516_v35  ;;  %v2511_v61 = vmul.f32 0.03125, %v2495_v30 }
 0x8ab   : > { %v2519_v50 = vadd.f32 1e-05, %v2511_v61 }
 0x8ac   : > { %v2492_v7 = vpop.xlane.xlu0 %2491  ;;  %v2501_v46 = vpop.xlane.xlu1 %2500 }
 0x8ad   : > { %3348 = vrsqrt.f32 %v2519_v50  ;;  %v2510_v26 = vmul.f32 0.03125, %v2492_v7  ;;  %v2513_v42 = vmul.f32 0.03125, %v2501_v46 }
 0x8af   : > { %v2518_v36 = vadd.f32 1e-05, %v2510_v26  ;;  %v2521_v31 = vadd.f32 1e-05, %v2513_v42 }
 0x8b0   : > { %v2498_v33 = vpop.xlane.xlu0 %2497  ;;  %v2507_v22 = vpop.xlane.xlu1 %2506 }
 0x8b1   : > { %3350 = vrsqrt.f32 %v2518_v36  ;;  %v2512_v38 = vmul.f32 0.03125, %v2498_v33  ;;  %v2515_v12 = vmul.f32 0.03125, %v2507_v22 }
 0x8b2   : > { %3352 = vrsqrt.f32 %v2521_v31 }
 0x8b3   : > { %v2520_v55 = vadd.f32 1e-05, %v2512_v38  ;;  %v2523_v16 = vadd.f32 1e-05, %v2515_v12 }
 0x8b4   : > { %v3345_v43 = vpop.eup %3344  ;;  %v2504_v60 = vpop.xlane.xlu0 %2503 }
 0x8b5   : > { %v2533_v37 = vmul.f32 %v3345_v43, %v4393_v54  ;;  %3354 = vrsqrt.f32 %v2520_v55  ;;  %v2514_v18 = vmul.f32 0.03125, %v2504_v60 }
 0x8b6   : > { %v3347_v24 = vpop.eup %3346  ;;  %3356 = vrsqrt.f32 %v2523_v16 }
 0x8b7   : > { %v2546_v11 = vmul.f32 %v2754_v3, %v2533_v37  ;;  %v2532_v13 = vmul.f32 %v3347_v24, %v4395_v34  ;;  %v2522_v4 = vadd.f32 1e-05, %v2514_v18 }
 0x8b9   : > { %v2559_v54 = vadd.f32 %v2755_v28, %v2546_v11  ;;  %v2545_v63 = vmul.f32 %v2754_v3, %v2532_v13  ;;  %3358 = vrsqrt.f32 %v2522_v4 }
 0x8ba   : > { %v3349_v56 = vpop.eup %3348 }
 0x8bb   : > { %2567 = vst.msk [vmem:[%s4446_s20 + $0x8] sm:$0xff] %vm260_vm0, %v2559_v54  ;;  %v2558_v5 = vadd.f32 %v2755_v28, %v2545_v63  ;;  %v2535_v45 = vmul.f32 %v3349_v56, %v4404_v9 }
 0x8bd   : > { %2566 = vst.msk [vmem:[%s4446_s20] sm:$0xff] %vm260_vm0, %v2558_v5  ;;  %v2548_v34 = vmul.f32 %v2754_v3, %v2535_v45 }
 0x8be   : > { %v3351_v15 = vpop.eup %3350 }
 0x8bf   : > { %v3353_v2 = vpop.eup %3352  ;;  %v2561_v53 = vadd.f32 %v2755_v28, %v2548_v34  ;;  %v2534_v41 = vmul.f32 %v3351_v15, %v4411_v57 }
 0x8c0   : > { %v2537_v51 = vmul.f32 %v3353_v2, %v4402_v1 }
 0x8c1   : > { %2569 = vst.msk [vmem:[%s4446_s20 + $0x18] sm:$0xff] %vm260_vm0, %v2561_v53  ;;  %v2547_v39 = vmul.f32 %v2754_v3, %v2534_v41 }
 0x8c2   : > { %v3355_v23 = vpop.eup %3354  ;;  %v2550_v6 = vmul.f32 %v2754_v3, %v2537_v51 }
 0x8c3   : > { %v3357_v9 = vpop.eup %3356  ;;  %v2560_v40 = vadd.f32 %v2755_v28, %v2547_v39  ;;  %v2536_v32 = vmul.f32 %v3355_v23, %v4418_v0 }
 0x8c4   : > { %v2563_v20 = vadd.f32 %v2755_v28, %v2550_v6  ;;  %v2539_v10 = vmul.f32 %v3357_v9, %v4409_v8 }
 0x8c5   : > { %2568 = vst.msk [vmem:[%s4446_s20 + $0x10] sm:$0xff] %vm260_vm0, %v2560_v40  ;;  %v2549_v57 = vmul.f32 %v2754_v3, %v2536_v32 }
 0x8c6   : > { %v3359_v62 = vpop.eup %3358  ;;  %2571 = vst.msk [vmem:[%s4446_s20 + $0x28] sm:$0xff] %vm260_vm0, %v2563_v20  ;;  %v2552_v1 = vmul.f32 %v2754_v3, %v2539_v10 }
 0x8c7   : > { %v2562_v29 = vadd.f32 %v2755_v28, %v2549_v57  ;;  %v2538_v59 = vmul.f32 %v3359_v62, %v4426_v27 }
 0x8c8   : > { %v2565_v47 = vadd.f32 %v2755_v28, %v2552_v1 }
 0x8c9   : > { %2570 = vst.msk [vmem:[%s4446_s20 + $0x20] sm:$0xff] %vm260_vm0, %v2562_v29  ;;  %v2551_v44 = vmul.f32 %v2754_v3, %v2538_v59 }
 0x8ca   : > { %2573 = vst.msk [vmem:[%s4446_s20 + $0x38] sm:$0xff] %vm260_vm0, %v2565_v47 }
 0x8cb   : > { %v2564_v0 = vadd.f32 %v2755_v28, %v2551_v44 }
 0x8cd   : > { %2572 = vst.msk [vmem:[%s4446_s20 + $0x30] sm:$0xff] %vm260_vm0, %v2564_v0 }
 0x8ce PF: > { %s16_s21 = sadd.s32 1, %s3374_s21  }
 0x8cf   : > { %p13_p4 = scmp.ge.s32.totalorder %s16_s21, 4  }
 0x8d1   :  { %15 = sbr.rel (!%p13_p4) target bundleno = 1 (0x1), region = 74 }

</bundles_post_ra>
